<compile_context>
chip_gen: v6e
topology: v6e:2x2x1
jax: 0.10.0
libtpu: 0.0.40
codegen_flags: <defaults>
</compile_context>

<pallas_src>
import functools

import numpy as np
import jax
import jax.numpy as jnp
from jax.experimental import pallas as pl
from jax.experimental.pallas import tpu as pltpu


def _pmf_kernel(u_ref, i_ref, o_ref):
    """u_ref, i_ref: (R, 128, Fp) gathered, bias-augmented rows (VMEM).
    o_ref: (R, 128) lane-dense output block.  Biases are folded into the last
    two table columns, so the row dot already includes ub + ib."""
    prod = u_ref[...] * i_ref[...]            # VPU elementwise, (R, 128, Fp)
    o_ref[...] = jnp.sum(prod, axis=-1)       # lane reduce -> (R, 128)


def prepare_pmf_tables(user_emb, item_emb, ub, ib):
    """Fold the bias tables into the embeddings.  Do this ONCE alongside the
    parameters (hoisted out of the per-call path per the performance review):
        u' = [u | ub | 1],  i' = [i | 1 | ib]   =>   u'.i' = u.i + ub + ib
    """
    n_users = user_emb.shape[0]
    n_items = item_emb.shape[0]
    u_aug = jnp.concatenate(
        [user_emb.astype(jnp.float32), ub.astype(jnp.float32),
         jnp.ones((n_users, 1), jnp.float32)], axis=1)
    i_aug = jnp.concatenate(
        [item_emb.astype(jnp.float32), jnp.ones((n_items, 1), jnp.float32),
         ib.astype(jnp.float32)], axis=1)
    return u_aug, i_aug


@functools.partial(jax.jit, static_argnames=("block_rows",))
def pmf_forward(users_index, items_index, u_aug, i_aug, *, block_rows=8):
    """Pallas PMF forward.

    users_index, items_index : () or (B,) int
    u_aug : (n_users, F+2) f32 bias-augmented user table (prepare_pmf_tables)
    i_aug : (n_items, F+2) f32 bias-augmented item table
    returns : () or (B,) f32  ==  (u_emb*i_emb).sum(-1) + ub + ib
    """
    scalar_in = (jnp.ndim(users_index) == 0)
    u_idx = jnp.atleast_1d(users_index).astype(jnp.int32)
    i_idx = jnp.atleast_1d(items_index).astype(jnp.int32)
    B = int(u_idx.shape[0])
    Fp = int(u_aug.shape[1])

    tb = block_rows * 128                      # batch elements per grid step
    num_tiles = pl.cdiv(B, tb)
    b_pad = num_tiles * tb
    pad = b_pad - B
    u_idx = jnp.pad(u_idx, (0, pad))           # pad with row 0 (valid, discarded)
    i_idx = jnp.pad(i_idx, (0, pad))

    # HBM-bandwidth-bound gather done by XLA (replaces v1's per-row DMA
    # descriptors).  Contiguous reshape to (rows_of_128, 128, Fp) is free.
    u_rows = jnp.take(u_aug, u_idx, axis=0).reshape(num_tiles * block_rows, 128, Fp)
    i_rows = jnp.take(i_aug, i_idx, axis=0).reshape(num_tiles * block_rows, 128, Fp)

    out = pl.pallas_call(
        _pmf_kernel,
        out_shape=jax.ShapeDtypeStruct((num_tiles * block_rows, 128), jnp.float32),
        grid=(num_tiles,),
        in_specs=[
            pl.BlockSpec((block_rows, 128, Fp), lambda t: (t, 0, 0)),
            pl.BlockSpec((block_rows, 128, Fp), lambda t: (t, 0, 0)),
        ],
        out_specs=pl.BlockSpec((block_rows, 128), lambda t: (t, 0)),
        compiler_params=pltpu.CompilerParams(
            dimension_semantics=("parallel",)),   # independent tiles -> v7x 2-TC sharding
    )(u_rows, i_rows)

    out = out.reshape(b_pad)[:B]
    return out[0] if scalar_in else out


def make_pmf_params(n_users, n_items, n_factors):
    """Deterministic parameter init mirroring the PyTorch __init__."""
    rs = np.random.RandomState(1)
    user_emb = jnp.asarray(0.1 * rs.rand(n_users, n_factors), dtype=jnp.float32)
    item_emb = jnp.asarray(0.1 * rs.rand(n_items, n_factors), dtype=jnp.float32)
    ub = jnp.asarray(rs.uniform(-0.01, 0.01, size=(n_users, 1)), dtype=jnp.float32)
    ib = jnp.asarray(rs.uniform(-0.01, 0.01, size=(n_items, 1)), dtype=jnp.float32)
    return user_emb, item_emb, ub, ib


if __name__ == "__main__":
    n_users, n_items, n_factors = 16, 32, 20
    batch = 8

    user_emb, item_emb, ub, ib = make_pmf_params(n_users, n_items, n_factors)
    # Bias folding hoisted out of the forward path (done once with the params).
    u_aug, i_aug = prepare_pmf_tables(user_emb, item_emb, ub, ib)

    key = jax.random.PRNGKey(0)
    ku, ki = jax.random.split(key)
    users_index = jax.random.randint(ku, (batch,), 0, n_users, dtype=jnp.int32)
    items_index = jax.random.randint(ki, (batch,), 0, n_items, dtype=jnp.int32)

    out = pmf_forward(users_index, items_index, u_aug, i_aug)
    out = jax.block_until_ready(out)

    # Pure-JAX reference for correctness.
    ref = ((user_emb[users_index] * item_emb[items_index]).sum(axis=1)
           + ub[users_index, 0] + ib[items_index, 0])
    assert out.shape == (batch,)
    assert jnp.allclose(out, ref, atol=1e-5, rtol=1e-5), (out, ref)

    # Scalar-index path (matches the PyTorch forward's 0-D branch).
    out0 = jax.block_until_ready(
        pmf_forward(users_index[0], items_index[0], u_aug, i_aug))
    assert jnp.allclose(out0, ref[0], atol=1e-5, rtol=1e-5), (out0, ref[0])

    print("KERNEL_OK")
</pallas_src>

<mosaic_0001>
module attributes {stable_mosaic.version = 11 : i64} {
  func.func @_pmf_kernel(%arg0: i32, %arg1: memref<8x128x22xf32, #tpu.memory_space<vmem>>, %arg2: memref<8x128x22xf32, #tpu.memory_space<vmem>>, %arg3: memref<8x128xf32, #tpu.memory_space<vmem>>) attributes {dimension_semantics = [#tpu.dimension_semantics<parallel>], iteration_bounds = array<i64: 1>, scalar_prefetch = 0 : i64, scratch_operands = 0 : i64, tpu.core_type = #tpu.core_type<tc>, window_params = [{transform_indices = @transform_0, window_bounds = array<i64: 8, 128, 22>}, {transform_indices = @transform_1, window_bounds = array<i64: 8, 128, 22>}, {transform_indices = @transform_2, window_bounds = array<i64: 8, 128>}]} {
    %c0 = arith.constant 0 : index
    %c0_0 = arith.constant 0 : index
    %c0_1 = arith.constant 0 : index
    %0 = vector.load %arg1[%c0, %c0_0, %c0_1] : memref<8x128x22xf32, #tpu.memory_space<vmem>>, vector<8x128x22xf32>
    %c0_2 = arith.constant 0 : index
    %c0_3 = arith.constant 0 : index
    %c0_4 = arith.constant 0 : index
    %1 = vector.load %arg2[%c0_2, %c0_3, %c0_4] : memref<8x128x22xf32, #tpu.memory_space<vmem>>, vector<8x128x22xf32>
    %2 = arith.mulf %0, %1 : vector<8x128x22xf32>
    %cst = arith.constant dense<0.000000e+00> : vector<8x128xf32>
    %3 = vector.multi_reduction <add>, %2, %cst [2] : vector<8x128x22xf32> to vector<8x128xf32>
    %c0_5 = arith.constant 0 : index
    %c0_6 = arith.constant 0 : index
    %4 = vector.load %arg3[%c0_5, %c0_6] : memref<8x128xf32, #tpu.memory_space<vmem>>, vector<8x128xf32>
    tpu.vector_store %arg3[%c0_5, %c0_6], %3 {strides = array<i32>} : memref<8x128xf32, #tpu.memory_space<vmem>>, vector<8x128xf32>,
    return
  }
  func.func @transform_0(%arg0: i32) -> (i32, i32, i32) {
    %c0_i32 = arith.constant 0 : i32
    %c0_i32_0 = arith.constant 0 : i32
    %c0_i32_1 = arith.constant 0 : i32
    return %arg0, %c0_i32, %c0_i32_0 : i32, i32, i32
  }
  func.func @transform_1(%arg0: i32) -> (i32, i32, i32) {
    %c0_i32 = arith.constant 0 : i32
    %c0_i32_0 = arith.constant 0 : i32
    %c0_i32_1 = arith.constant 0 : i32
    return %arg0, %c0_i32, %c0_i32_0 : i32, i32, i32
  }
  func.func @transform_2(%arg0: i32) -> (i32, i32) {
    %c0_i32 = arith.constant 0 : i32
    %c0_i32_0 = arith.constant 0 : i32
    return %arg0, %c0_i32 : i32, i32
  }
}

</mosaic_0001>

<bundles_post_ra>
// kernel: pmf_forward.1
= control target key start
LH: loop header
LB: loop body
LE: loop exit
PB: predicated region body
PF: predicated region fallthrough
CT: control target
= control target key end

     0   :  { %vm395_vm0 = vcmask 179200   ;;  %vm919_vm1 = vcmask 130112   ;;  %vm926_vm2 = vcmask 195712   ;;  %vm933_vm3 = vcmask 261312   ;;  %s2875_s0 = inlined_call_operand.vmem [shape: f32[8,128,22], index: 0, kind: input, shape index: {}]   ;;  %s2876_s1 = inlined_call_operand.vmem [shape: f32[8,128,22], index: 1, kind: input, shape index: {}]   ;;  %s2877_s2 = inlined_call_operand.vmem [shape: f32[8,128], index: 2, kind: output, shape index: {}]  }
   0x1   :  { %v13_v0 = vld [vmem:[%s2875_s0 + $0x10] sm:$0xff]  ;;  %v11_v2 = vld [vmem:[%s2875_s0] sm:$0xff]  ;;  %v14_v5 = vld [vmem:[%s2875_s0 + $0x18] sm:$0xff]  ;;  %vm940_vm4 = vcmask 326912   ;;  %vm947_vm5 = vcmask 392512   ;;  %vm954_vm6 = vcmask 458112  }
   0x2   :  { %v141_v1 = vld [vmem:[%s2876_s1 + $0x10] sm:$0xff]  ;;  %v139_v4 = vld [vmem:[%s2876_s1] sm:$0xff]  ;;  %v142_v6 = vld [vmem:[%s2876_s1 + $0x18] sm:$0xff]  ;;  %vm961_vm7 = vcmask 523712   ;;  %vm968_vm8 = vcmask 589312   ;;  %vm975_vm9 = vcmask 654912  }
   0x3   :  { %v269_v3 = vmul.f32 %v141_v1, %v13_v0  ;;  %v267_v7 = vmul.f32 %v139_v4, %v11_v2  ;;  %v270_v8 = vmul.f32 %v142_v6, %v14_v5  ;;  %v12_v9 = vld [vmem:[%s2875_s0 + $0x8] sm:$0xff]  ;;  %v15_v15 = vld [vmem:[%s2875_s0 + $0x20] sm:$0xff]  ;;  %v18_v22 = vld [vmem:[%s2875_s0 + $0x38] sm:$0xff]  ;;  %vm982_vm10 = vcmask 720512  }
   0x4   :  { %v140_v10 = vld [vmem:[%s2876_s1 + $0x8] sm:$0xff]  ;;  %v143_v16 = vld [vmem:[%s2876_s1 + $0x20] sm:$0xff]  ;;  %v146_v23 = vld [vmem:[%s2876_s1 + $0x38] sm:$0xff]  ;;  %vm989_vm11 = vcmask 786112   ;;  %vm996_vm12 = vcmask 851712   ;;  %vm2878_vm13 = vcmask 917312  }
   0x5   :  { %v16_v11 = vld [vmem:[%s2875_s0 + $0x28] sm:$0xff]  ;;  %v402_v12 = vsel %vm395_vm0, %v269_v3, 0.0  ;;  %v268_v13 = vmul.f32 %v140_v10, %v12_v9  ;;  %v396_v17 = vsel %vm395_vm0, %v267_v7, 0.0  ;;  %v405_v18 = vsel %vm395_vm0, %v270_v8, 0.0  ;;  %v17_v24 = vld [vmem:[%s2875_s0 + $0x30] sm:$0xff]  ;;  %v19_v32 = vld [vmem:[%s2875_s0 + $0x40] sm:$0xff] }
   0x6   :  { %v144_v14 = vld [vmem:[%s2876_s1 + $0x28] sm:$0xff]  ;;  %403 = vadd.xlane.f32.xlu1 %v402_v12  ;;  %397 = vadd.xlane.f32.xlu0 %v396_v17  ;;  %v271_v21 = vmul.f32 %v143_v16, %v15_v15  ;;  %v145_v25 = vld [vmem:[%s2876_s1 + $0x30] sm:$0xff]  ;;  %v274_v27 = vmul.f32 %v146_v23, %v18_v22  ;;  %v147_v33 = vld [vmem:[%s2876_s1 + $0x40] sm:$0xff]  ;;  %vm1010_vm14 = vcmask 982912   ;;  %vm1017_vm15 = vcmask 1048512  }
   0x7   :  { %v272_v19 = vmul.f32 %v144_v14, %v16_v11  ;;  %v399_v20 = vsel %vm395_vm0, %v268_v13, 0.0  ;;  %v273_v29 = vmul.f32 %v145_v25, %v17_v24  ;;  %v20_v30 = vld [vmem:[%s2875_s0 + $0x48] sm:$0xff]  ;;  %v275_v37 = vmul.f32 %v147_v33, %v19_v32  ;;  %v22_v38 = vld [vmem:[%s2875_s0 + $0x58] sm:$0xff]  ;;  %v21_v40 = vld [vmem:[%s2875_s0 + $0x50] sm:$0xff] }
   0x8   :  { %v408_v28 = vsel %vm395_vm0, %v271_v21, 0.0  ;;  %v148_v31 = vld [vmem:[%s2876_s1 + $0x48] sm:$0xff]  ;;  %v417_v34 = vsel %vm395_vm0, %v274_v27, 0.0  ;;  %v150_v39 = vld [vmem:[%s2876_s1 + $0x58] sm:$0xff]  ;;  %v149_v41 = vld [vmem:[%s2876_s1 + $0x50] sm:$0xff] }
   0x9   :  { %v411_v26 = vsel %vm395_vm0, %v272_v19, 0.0  ;;  %v276_v35 = vmul.f32 %v148_v31, %v20_v30  ;;  %v414_v36 = vsel %vm395_vm0, %v273_v29, 0.0  ;;  %v278_v43 = vmul.f32 %v150_v39, %v22_v38  ;;  %v24_v46 = vld [vmem:[%s2875_s0 + $0x68] sm:$0xff]  ;;  %v23_v48 = vld [vmem:[%s2875_s0 + $0x60] sm:$0xff]  ;;  %v26_v54 = vld [vmem:[%s2875_s0 + $0x78] sm:$0xff] }
   0xa   :  { %406 = vadd.xlane.f32.xlu1 %v405_v18  ;;  %400 = vadd.xlane.f32.xlu0 %v399_v20  ;;  %v420_v44 = vsel %vm395_vm0, %v275_v37, 0.0  ;;  %v277_v45 = vmul.f32 %v149_v41, %v21_v40  ;;  %v152_v47 = vld [vmem:[%s2876_s1 + $0x68] sm:$0xff]  ;;  %v151_v49 = vld [vmem:[%s2876_s1 + $0x60] sm:$0xff]  ;;  %v154_v55 = vld [vmem:[%s2876_s1 + $0x78] sm:$0xff] }
   0xb   :  { %v423_v42 = vsel %vm395_vm0, %v276_v35, 0.0  ;;  %v429_v50 = vsel %vm395_vm0, %v278_v43, 0.0  ;;  %v280_v51 = vmul.f32 %v152_v47, %v24_v46  ;;  %v279_v53 = vmul.f32 %v151_v49, %v23_v48  ;;  %v25_v56 = vld [vmem:[%s2875_s0 + $0x70] sm:$0xff]  ;;  %v28_v62 = vld [vmem:[%s2875_s0 + $0x88] sm:$0xff]  ;;  %v27_v0 = vld [vmem:[%s2875_s0 + $0x80] sm:$0xff] }
   0xc   :  { %v426_v52 = vsel %vm395_vm0, %v277_v45, 0.0  ;;  %v153_v57 = vld [vmem:[%s2876_s1 + $0x70] sm:$0xff]  ;;  %v282_v59 = vmul.f32 %v154_v55, %v26_v54  ;;  %v156_v63 = vld [vmem:[%s2876_s1 + $0x88] sm:$0xff]  ;;  %v155_v1 = vld [vmem:[%s2876_s1 + $0x80] sm:$0xff] }
   0xd   :  { %v435_v58 = vsel %vm395_vm0, %v280_v51, 0.0  ;;  %v432_v60 = vsel %vm395_vm0, %v279_v53, 0.0  ;;  %v281_v61 = vmul.f32 %v153_v57, %v25_v56  ;;  %v284_v3 = vmul.f32 %v156_v63, %v28_v62  ;;  %v30_v6 = vld [vmem:[%s2875_s0 + $0x98] sm:$0xff]  ;;  %v29_v8 = vld [vmem:[%s2875_s0 + $0x90] sm:$0xff]  ;;  %v32_v14 = vld [vmem:[%s2875_s0 + $0xa8] sm:$0xff] }
   0xe   :  { %412 = vadd.xlane.f32.xlu1 %v411_v26  ;;  %409 = vadd.xlane.f32.xlu0 %v408_v28  ;;  %v441_v2 = vsel %vm395_vm0, %v282_v59, 0.0  ;;  %v283_v5 = vmul.f32 %v155_v1, %v27_v0  ;;  %v158_v7 = vld [vmem:[%s2876_s1 + $0x98] sm:$0xff]  ;;  %v157_v9 = vld [vmem:[%s2876_s1 + $0x90] sm:$0xff]  ;;  %v160_v15 = vld [vmem:[%s2876_s1 + $0xa8] sm:$0xff] }
   0xf   :  { %v438_v4 = vsel %vm395_vm0, %v281_v61, 0.0  ;;  %v447_v10 = vsel %vm395_vm0, %v284_v3, 0.0  ;;  %v286_v11 = vmul.f32 %v158_v7, %v30_v6  ;;  %v285_v13 = vmul.f32 %v157_v9, %v29_v8  ;;  %v31_v16 = vld [vmem:[%s2875_s0 + $0xa0] sm:$0xff]  ;;  %v34_v22 = vld [vmem:[%s2875_s0 + $0xb8] sm:$0xff]  ;;  %v33_v24 = vld [vmem:[%s2875_s0 + $0xb0] sm:$0xff] }
  0x10   :  { %v444_v12 = vsel %vm395_vm0, %v283_v5, 0.0  ;;  %v159_v17 = vld [vmem:[%s2876_s1 + $0xa0] sm:$0xff]  ;;  %v288_v19 = vmul.f32 %v160_v15, %v32_v14  ;;  %v162_v23 = vld [vmem:[%s2876_s1 + $0xb8] sm:$0xff]  ;;  %v161_v25 = vld [vmem:[%s2876_s1 + $0xb0] sm:$0xff] }
  0x11   :  { %v453_v18 = vsel %vm395_vm0, %v286_v11, 0.0  ;;  %v450_v20 = vsel %vm395_vm0, %v285_v13, 0.0  ;;  %v287_v21 = vmul.f32 %v159_v17, %v31_v16  ;;  %v290_v27 = vmul.f32 %v162_v23, %v34_v22  ;;  %v36_v30 = vld [vmem:[%s2875_s0 + $0xc8] sm:$0xff]  ;;  %v35_v32 = vld [vmem:[%s2875_s0 + $0xc0] sm:$0xff]  ;;  %v38_v38 = vld [vmem:[%s2875_s0 + $0xd8] sm:$0xff] }
  0x12   :  { %418 = vadd.xlane.f32.xlu1 %v417_v34  ;;  %415 = vadd.xlane.f32.xlu0 %v414_v36  ;;  %v459_v26 = vsel %vm395_vm0, %v288_v19, 0.0  ;;  %v289_v29 = vmul.f32 %v161_v25, %v33_v24  ;;  %v164_v31 = vld [vmem:[%s2876_s1 + $0xc8] sm:$0xff]  ;;  %v163_v33 = vld [vmem:[%s2876_s1 + $0xc0] sm:$0xff]  ;;  %v166_v39 = vld [vmem:[%s2876_s1 + $0xd8] sm:$0xff] }
  0x13   :  { %v456_v28 = vsel %vm395_vm0, %v287_v21, 0.0  ;;  %v465_v34 = vsel %vm395_vm0, %v290_v27, 0.0  ;;  %v292_v35 = vmul.f32 %v164_v31, %v36_v30  ;;  %v291_v37 = vmul.f32 %v163_v33, %v35_v32  ;;  %v37_v40 = vld [vmem:[%s2875_s0 + $0xd0] sm:$0xff]  ;;  %v40_v46 = vld [vmem:[%s2875_s0 + $0xe8] sm:$0xff]  ;;  %v39_v48 = vld [vmem:[%s2875_s0 + $0xe0] sm:$0xff] }
  0x14   :  { %v462_v36 = vsel %vm395_vm0, %v289_v29, 0.0  ;;  %v165_v41 = vld [vmem:[%s2876_s1 + $0xd0] sm:$0xff]  ;;  %v294_v43 = vmul.f32 %v166_v39, %v38_v38  ;;  %v168_v47 = vld [vmem:[%s2876_s1 + $0xe8] sm:$0xff]  ;;  %v167_v49 = vld [vmem:[%s2876_s1 + $0xe0] sm:$0xff] }
  0x15   :  { %v293_v45 = vmul.f32 %v165_v41, %v37_v40  ;;  %v296_v51 = vmul.f32 %v168_v47, %v40_v46  ;;  %v295_v53 = vmul.f32 %v167_v49, %v39_v48  ;;  %v42_v54 = vld [vmem:[%s2875_s0 + $0xf8] sm:$0xff]  ;;  %v41_v56 = vld [vmem:[%s2875_s0 + $0xf0] sm:$0xff]  ;;  %v44_v62 = vld [vmem:[%s2875_s0 + $0x108] sm:$0xff] }
  0x16   :  { %424 = vadd.xlane.f32.xlu1 %v423_v42  ;;  %421 = vadd.xlane.f32.xlu0 %v420_v44  ;;  %v471_v42 = vsel %vm395_vm0, %v292_v35, 0.0  ;;  %v468_v44 = vsel %vm395_vm0, %v291_v37, 0.0  ;;  %v170_v55 = vld [vmem:[%s2876_s1 + $0xf8] sm:$0xff]  ;;  %v169_v57 = vld [vmem:[%s2876_s1 + $0xf0] sm:$0xff]  ;;  %v172_v63 = vld [vmem:[%s2876_s1 + $0x108] sm:$0xff] }
  0x17   :  { %v298_v59 = vmul.f32 %v170_v55, %v42_v54  ;;  %v297_v61 = vmul.f32 %v169_v57, %v41_v56  ;;  %v43_v0 = vld [vmem:[%s2875_s0 + $0x100] sm:$0xff]  ;;  %v300_v3 = vmul.f32 %v172_v63, %v44_v62  ;;  %v46_v6 = vld [vmem:[%s2875_s0 + $0x118] sm:$0xff]  ;;  %v45_v8 = vld [vmem:[%s2875_s0 + $0x110] sm:$0xff] }
  0x18   :  { %v171_v1 = vld [vmem:[%s2876_s1 + $0x100] sm:$0xff]  ;;  %v174_v7 = vld [vmem:[%s2876_s1 + $0x118] sm:$0xff]  ;;  %v173_v9 = vld [vmem:[%s2876_s1 + $0x110] sm:$0xff] }
  0x19   :  { %v299_v5 = vmul.f32 %v171_v1, %v43_v0  ;;  %v302_v11 = vmul.f32 %v174_v7, %v46_v6  ;;  %v301_v13 = vmul.f32 %v173_v9, %v45_v8  ;;  %v48_v14 = vld [vmem:[%s2875_s0 + $0x128] sm:$0xff]  ;;  %v47_v16 = vld [vmem:[%s2875_s0 + $0x120] sm:$0xff]  ;;  %v50_v22 = vld [vmem:[%s2875_s0 + $0x138] sm:$0xff] }
  0x1a   :  { %430 = vadd.xlane.f32.xlu1 %v429_v50  ;;  %427 = vadd.xlane.f32.xlu0 %v426_v52  ;;  %v477_v50 = vsel %vm395_vm0, %v294_v43, 0.0  ;;  %v474_v52 = vsel %vm395_vm0, %v293_v45, 0.0  ;;  %v176_v15 = vld [vmem:[%s2876_s1 + $0x128] sm:$0xff]  ;;  %v175_v17 = vld [vmem:[%s2876_s1 + $0x120] sm:$0xff]  ;;  %v178_v23 = vld [vmem:[%s2876_s1 + $0x138] sm:$0xff] }
  0x1b   :  { %v304_v19 = vmul.f32 %v176_v15, %v48_v14  ;;  %v303_v21 = vmul.f32 %v175_v17, %v47_v16  ;;  %v49_v24 = vld [vmem:[%s2875_s0 + $0x130] sm:$0xff]  ;;  %v306_v27 = vmul.f32 %v178_v23, %v50_v22  ;;  %v52_v30 = vld [vmem:[%s2875_s0 + $0x148] sm:$0xff]  ;;  %v51_v32 = vld [vmem:[%s2875_s0 + $0x140] sm:$0xff] }
  0x1c   :  { %v177_v25 = vld [vmem:[%s2876_s1 + $0x130] sm:$0xff]  ;;  %v180_v31 = vld [vmem:[%s2876_s1 + $0x148] sm:$0xff]  ;;  %v179_v33 = vld [vmem:[%s2876_s1 + $0x140] sm:$0xff] }
  0x1d   :  { %v305_v29 = vmul.f32 %v177_v25, %v49_v24  ;;  %v308_v35 = vmul.f32 %v180_v31, %v52_v30  ;;  %v307_v37 = vmul.f32 %v179_v33, %v51_v32  ;;  %v54_v38 = vld [vmem:[%s2875_s0 + $0x158] sm:$0xff]  ;;  %v53_v40 = vld [vmem:[%s2875_s0 + $0x150] sm:$0xff]  ;;  %v56_v46 = vld [vmem:[%s2875_s0 + $0x168] sm:$0xff] }
  0x1e   :  { %436 = vadd.xlane.f32.xlu1 %v435_v58  ;;  %433 = vadd.xlane.f32.xlu0 %v432_v60  ;;  %v483_v58 = vsel %vm395_vm0, %v296_v51, 0.0  ;;  %v480_v60 = vsel %vm395_vm0, %v295_v53, 0.0  ;;  %v182_v39 = vld [vmem:[%s2876_s1 + $0x158] sm:$0xff]  ;;  %v181_v41 = vld [vmem:[%s2876_s1 + $0x150] sm:$0xff]  ;;  %v184_v47 = vld [vmem:[%s2876_s1 + $0x168] sm:$0xff] }
  0x1f   :  { %v310_v43 = vmul.f32 %v182_v39, %v54_v38  ;;  %v309_v45 = vmul.f32 %v181_v41, %v53_v40  ;;  %v55_v48 = vld [vmem:[%s2875_s0 + $0x160] sm:$0xff]  ;;  %v312_v51 = vmul.f32 %v184_v47, %v56_v46  ;;  %v58_v54 = vld [vmem:[%s2875_s0 + $0x178] sm:$0xff]  ;;  %v57_v56 = vld [vmem:[%s2875_s0 + $0x170] sm:$0xff] }
  0x20   :  { %v183_v49 = vld [vmem:[%s2876_s1 + $0x160] sm:$0xff]  ;;  %v186_v55 = vld [vmem:[%s2876_s1 + $0x178] sm:$0xff]  ;;  %v185_v57 = vld [vmem:[%s2876_s1 + $0x170] sm:$0xff] }
  0x21   :  { %v311_v53 = vmul.f32 %v183_v49, %v55_v48  ;;  %v60_v62 = vld [vmem:[%s2875_s0 + $0x188] sm:$0xff]  ;;  %v59_v0 = vld [vmem:[%s2875_s0 + $0x180] sm:$0xff]  ;;  %v62_v6 = vld [vmem:[%s2875_s0 + $0x198] sm:$0xff] }
  0x22   :  { %442 = vadd.xlane.f32.xlu1 %v441_v2  ;;  %439 = vadd.xlane.f32.xlu0 %v438_v4  ;;  %v489_v2 = vsel %vm395_vm0, %v298_v59, 0.0  ;;  %v486_v4 = vsel %vm395_vm0, %v297_v61, 0.0  ;;  %v314_v59 = vmul.f32 %v186_v55, %v58_v54  ;;  %v313_v61 = vmul.f32 %v185_v57, %v57_v56  ;;  %v188_v63 = vld [vmem:[%s2876_s1 + $0x188] sm:$0xff]  ;;  %v187_v1 = vld [vmem:[%s2876_s1 + $0x180] sm:$0xff]  ;;  %v190_v7 = vld [vmem:[%s2876_s1 + $0x198] sm:$0xff] }
  0x23   :  { %v61_v8 = vld [vmem:[%s2875_s0 + $0x190] sm:$0xff]  ;;  %v64_v14 = vld [vmem:[%s2875_s0 + $0x1a8] sm:$0xff]  ;;  %v63_v16 = vld [vmem:[%s2875_s0 + $0x1a0] sm:$0xff] }
  0x24   :  { %v189_v9 = vld [vmem:[%s2876_s1 + $0x190] sm:$0xff]  ;;  %v192_v15 = vld [vmem:[%s2876_s1 + $0x1a8] sm:$0xff]  ;;  %v191_v17 = vld [vmem:[%s2876_s1 + $0x1a0] sm:$0xff] }
  0x25   :  { %v66_v22 = vld [vmem:[%s2875_s0 + $0x1b8] sm:$0xff]  ;;  %v65_v24 = vld [vmem:[%s2875_s0 + $0x1b0] sm:$0xff]  ;;  %v68_v30 = vld [vmem:[%s2875_s0 + $0x1c8] sm:$0xff] }
  0x26   :  { %448 = vadd.xlane.f32.xlu1 %v447_v10  ;;  %445 = vadd.xlane.f32.xlu0 %v444_v12  ;;  %v495_v10 = vsel %vm395_vm0, %v300_v3, 0.0  ;;  %v492_v12 = vsel %vm395_vm0, %v299_v5, 0.0  ;;  %v316_v3 = vmul.f32 %v188_v63, %v60_v62  ;;  %v315_v5 = vmul.f32 %v187_v1, %v59_v0  ;;  %v194_v23 = vld [vmem:[%s2876_s1 + $0x1b8] sm:$0xff]  ;;  %v193_v25 = vld [vmem:[%s2876_s1 + $0x1b0] sm:$0xff]  ;;  %v196_v31 = vld [vmem:[%s2876_s1 + $0x1c8] sm:$0xff] }
  0x27   :  { %v67_v32 = vld [vmem:[%s2875_s0 + $0x1c0] sm:$0xff]  ;;  %v70_v38 = vld [vmem:[%s2875_s0 + $0x1d8] sm:$0xff]  ;;  %v69_v40 = vld [vmem:[%s2875_s0 + $0x1d0] sm:$0xff] }
  0x28   :  { %v195_v33 = vld [vmem:[%s2876_s1 + $0x1c0] sm:$0xff]  ;;  %v198_v39 = vld [vmem:[%s2876_s1 + $0x1d8] sm:$0xff]  ;;  %v197_v41 = vld [vmem:[%s2876_s1 + $0x1d0] sm:$0xff] }
  0x29   :  { %v72_v46 = vld [vmem:[%s2875_s0 + $0x1e8] sm:$0xff]  ;;  %v71_v48 = vld [vmem:[%s2875_s0 + $0x1e0] sm:$0xff]  ;;  %v74_v54 = vld [vmem:[%s2875_s0 + $0x1f8] sm:$0xff] }
  0x2a   :  { %454 = vadd.xlane.f32.xlu1 %v453_v18  ;;  %451 = vadd.xlane.f32.xlu0 %v450_v20  ;;  %v501_v18 = vsel %vm395_vm0, %v302_v11, 0.0  ;;  %v498_v20 = vsel %vm395_vm0, %v301_v13, 0.0  ;;  %v318_v11 = vmul.f32 %v190_v7, %v62_v6  ;;  %v317_v13 = vmul.f32 %v189_v9, %v61_v8  ;;  %v200_v47 = vld [vmem:[%s2876_s1 + $0x1e8] sm:$0xff]  ;;  %v199_v49 = vld [vmem:[%s2876_s1 + $0x1e0] sm:$0xff]  ;;  %v202_v55 = vld [vmem:[%s2876_s1 + $0x1f8] sm:$0xff] }
  0x2b   :  { %v73_v56 = vld [vmem:[%s2875_s0 + $0x1f0] sm:$0xff]  ;;  %v76_v62 = vld [vmem:[%s2875_s0 + $0x208] sm:$0xff]  ;;  %v75_v0 = vld [vmem:[%s2875_s0 + $0x200] sm:$0xff] }
  0x2c   :  { %v201_v57 = vld [vmem:[%s2876_s1 + $0x1f0] sm:$0xff]  ;;  %v204_v63 = vld [vmem:[%s2876_s1 + $0x208] sm:$0xff]  ;;  %v203_v1 = vld [vmem:[%s2876_s1 + $0x200] sm:$0xff] }
  0x2d   :  { %v78_v6 = vld [vmem:[%s2875_s0 + $0x218] sm:$0xff]  ;;  %v77_v8 = vld [vmem:[%s2875_s0 + $0x210] sm:$0xff] }
  0x2e   :  { %460 = vadd.xlane.f32.xlu1 %v459_v26  ;;  %457 = vadd.xlane.f32.xlu0 %v456_v28  ;;  %v507_v26 = vsel %vm395_vm0, %v304_v19, 0.0  ;;  %v504_v28 = vsel %vm395_vm0, %v303_v21, 0.0  ;;  %v320_v19 = vmul.f32 %v192_v15, %v64_v14  ;;  %v319_v21 = vmul.f32 %v191_v17, %v63_v16  ;;  %v206_v7 = vld [vmem:[%s2876_s1 + $0x218] sm:$0xff]  ;;  %v205_v9 = vld [vmem:[%s2876_s1 + $0x210] sm:$0xff]  ;;  %v80_v14 = vld [vmem:[%s2875_s0 + $0x228] sm:$0xff] }
  0x2f   :  { %v208_v15 = vld [vmem:[%s2876_s1 + $0x228] sm:$0xff]  ;;  %v79_v16 = vld [vmem:[%s2875_s0 + $0x220] sm:$0xff] }
  0x30   :  { %v207_v17 = vld [vmem:[%s2876_s1 + $0x220] sm:$0xff] }
  0x32   :  { %466 = vadd.xlane.f32.xlu1 %v465_v34  ;;  %463 = vadd.xlane.f32.xlu0 %v462_v36  ;;  %v513_v34 = vsel %vm395_vm0, %v306_v27, 0.0  ;;  %v510_v36 = vsel %vm395_vm0, %v305_v29, 0.0  ;;  %v322_v27 = vmul.f32 %v194_v23, %v66_v22  ;;  %v321_v29 = vmul.f32 %v193_v25, %v65_v24  ;;  %v82_v23 = vld [vmem:[%s2875_s0 + $0x238] sm:$0xff]  ;;  %v81_v25 = vld [vmem:[%s2875_s0 + $0x230] sm:$0xff] }
  0x33   :  { %v335_v22 = vmul.f32 %v207_v17, %v79_v16  ;;  %v210_v24 = vld [vmem:[%s2876_s1 + $0x238] sm:$0xff] }
  0x36   :  { %472 = vadd.xlane.f32.xlu1 %v471_v42  ;;  %469 = vadd.xlane.f32.xlu0 %v468_v44  ;;  %v519_v42 = vsel %vm395_vm0, %v308_v35, 0.0  ;;  %v516_v44 = vsel %vm395_vm0, %v307_v37, 0.0  ;;  %v324_v35 = vmul.f32 %v196_v31, %v68_v30  ;;  %v323_v37 = vmul.f32 %v195_v33, %v67_v32  ;;  %v84_v32 = vld [vmem:[%s2875_s0 + $0x248] sm:$0xff] }
  0x37   :  { %v600_v30 = vsel %vm395_vm0, %v335_v22, 0.0  ;;  %v212_v33 = vld [vmem:[%s2876_s1 + $0x248] sm:$0xff]  ;;  %v218_v22 = vld [vmem:[%s2876_s1 + $0x278] sm:$0xff] }
  0x3a   :  { %478 = vadd.xlane.f32.xlu1 %v477_v50  ;;  %475 = vadd.xlane.f32.xlu0 %v474_v52  ;;  %v525_v50 = vsel %vm395_vm0, %v310_v43, 0.0  ;;  %v522_v52 = vsel %vm395_vm0, %v309_v45, 0.0  ;;  %v326_v43 = vmul.f32 %v198_v39, %v70_v38  ;;  %v325_v45 = vmul.f32 %v197_v41, %v69_v40  ;;  %v211_v38 = vld [vmem:[%s2876_s1 + $0x240] sm:$0xff] }
  0x3e   :  { %484 = vadd.xlane.f32.xlu1 %v483_v58  ;;  %481 = vadd.xlane.f32.xlu0 %v480_v60  ;;  %v531_v58 = vsel %vm395_vm0, %v312_v51, 0.0  ;;  %v528_v60 = vsel %vm395_vm0, %v311_v53, 0.0  ;;  %v328_v51 = vmul.f32 %v200_v47, %v72_v46  ;;  %v327_v53 = vmul.f32 %v199_v49, %v71_v48  ;;  %v86_v48 = vld [vmem:[%s2875_s0 + $0x258] sm:$0xff] }
  0x3f   :  { %v214_v49 = vld [vmem:[%s2876_s1 + $0x258] sm:$0xff] }
  0x42   :  { %490 = vadd.xlane.f32.xlu1 %v489_v2  ;;  %487 = vadd.xlane.f32.xlu0 %v486_v4  ;;  %v537_v2 = vsel %vm395_vm0, %v314_v59, 0.0  ;;  %v534_v4 = vsel %vm395_vm0, %v313_v61, 0.0  ;;  %v330_v59 = vmul.f32 %v202_v55, %v74_v54  ;;  %v329_v61 = vmul.f32 %v201_v57, %v73_v56  ;;  %v213_v54 = vld [vmem:[%s2876_s1 + $0x250] sm:$0xff] }
  0x46   :  { %496 = vadd.xlane.f32.xlu1 %v495_v10  ;;  %493 = vadd.xlane.f32.xlu0 %v492_v12  ;;  %v543_v10 = vsel %vm395_vm0, %v316_v3, 0.0  ;;  %v540_v12 = vsel %vm395_vm0, %v315_v5, 0.0  ;;  %v332_v3 = vmul.f32 %v204_v63, %v76_v62  ;;  %v331_v5 = vmul.f32 %v203_v1, %v75_v0  ;;  %v88_v1 = vld [vmem:[%s2875_s0 + $0x268] sm:$0xff] }
  0x4a   :  { %502 = vadd.xlane.f32.xlu1 %v501_v18  ;;  %499 = vadd.xlane.f32.xlu0 %v498_v20  ;;  %v549_v18 = vsel %vm395_vm0, %v318_v11, 0.0  ;;  %v546_v20 = vsel %vm395_vm0, %v317_v13, 0.0  ;;  %v334_v11 = vmul.f32 %v206_v7, %v78_v6  ;;  %v333_v13 = vmul.f32 %v205_v9, %v77_v8  ;;  %v87_v7 = vld [vmem:[%s2875_s0 + $0x260] sm:$0xff] }
  0x4b   :  { %v215_v8 = vld [vmem:[%s2876_s1 + $0x260] sm:$0xff] }
  0x4e   :  { %508 = vadd.xlane.f32.xlu1 %v507_v26  ;;  %505 = vadd.xlane.f32.xlu0 %v504_v28  ;;  %v555_v26 = vsel %vm395_vm0, %v320_v19, 0.0  ;;  %v552_v28 = vsel %vm395_vm0, %v319_v21, 0.0  ;;  %v597_v19 = vsel %vm395_vm0, %v334_v11, 0.0  ;;  %v594_v21 = vsel %vm395_vm0, %v333_v13, 0.0 }
  0x52   :  { %514 = vadd.xlane.f32.xlu1 %v513_v34  ;;  %511 = vadd.xlane.f32.xlu0 %v510_v36  ;;  %v561_v34 = vsel %vm395_vm0, %v322_v27, 0.0  ;;  %v558_v36 = vsel %vm395_vm0, %v321_v29, 0.0  ;;  %v338_v29 = vmul.f32 %v210_v24, %v82_v23 }
  0x54   :  { %v609_v41 = vsel %vm395_vm0, %v338_v29, 0.0  ;;  %v217_v29 = vld [vmem:[%s2876_s1 + $0x270] sm:$0xff] }
  0x56   :  { %520 = vadd.xlane.f32.xlu1 %v519_v42  ;;  %517 = vadd.xlane.f32.xlu0 %v516_v44  ;;  %v567_v42 = vsel %vm395_vm0, %v324_v35, 0.0  ;;  %v564_v44 = vsel %vm395_vm0, %v323_v37, 0.0  ;;  %v83_v37 = vld [vmem:[%s2875_s0 + $0x240] sm:$0xff] }
  0x57   :  { %v339_v46 = vmul.f32 %v211_v38, %v83_v37 }
  0x59   :  { %v612_v62 = vsel %vm395_vm0, %v339_v46, 0.0 }
  0x5a   :  { %526 = vadd.xlane.f32.xlu1 %v525_v50  ;;  %523 = vadd.xlane.f32.xlu0 %v522_v52  ;;  %v573_v50 = vsel %vm395_vm0, %v326_v43, 0.0  ;;  %v570_v52 = vsel %vm395_vm0, %v325_v45, 0.0 }
  0x5e   :  { %532 = vadd.xlane.f32.xlu1 %v531_v58  ;;  %529 = vadd.xlane.f32.xlu0 %v528_v60  ;;  %v579_v58 = vsel %vm395_vm0, %v328_v51, 0.0  ;;  %v576_v60 = vsel %vm395_vm0, %v327_v53, 0.0  ;;  %v85_v53 = vld [vmem:[%s2875_s0 + $0x250] sm:$0xff] }
  0x5f   :  { %v341_v0 = vmul.f32 %v213_v54, %v85_v53 }
  0x62   :  { %538 = vadd.xlane.f32.xlu1 %v537_v2  ;;  %535 = vadd.xlane.f32.xlu0 %v534_v4  ;;  %v585_v2 = vsel %vm395_vm0, %v330_v59, 0.0  ;;  %v582_v4 = vsel %vm395_vm0, %v329_v61, 0.0 }
  0x66   :  { %544 = vadd.xlane.f32.xlu1 %v543_v10  ;;  %541 = vadd.xlane.f32.xlu0 %v540_v12  ;;  %v591_v10 = vsel %vm395_vm0, %v332_v3, 0.0  ;;  %v588_v12 = vsel %vm395_vm0, %v331_v5, 0.0 }
  0x6a   :  { %550 = vadd.xlane.f32.xlu1 %v549_v18  ;;  %547 = vadd.xlane.f32.xlu0 %v546_v20  ;;  %v908_v18 = vlaneseq  ;;  %v336_v20 = vmul.f32 %v208_v15, %v80_v14 }
  0x6c   :  { %v2107_v27 = vand.u32 127, %v908_v18 }
  0x6e   :  { %556 = vadd.xlane.f32.xlu1 %v555_v26  ;;  %553 = vadd.xlane.f32.xlu0 %v552_v28  ;;  %v209_v26 = vld [vmem:[%s2876_s1 + $0x230] sm:$0xff]  ;;  %v603_v28 = vsel %vm395_vm0, %v336_v20, 0.0  ;;  %v928_v35 = vadd.s32 4294967272, %v2107_v27  ;;  %v921_v39 = vadd.s32 4294967280, %v2107_v27  ;;  %v942_v43 = vadd.s32 4294967256, %v2107_v27 }
  0x6f   :  { %v337_v31 = vmul.f32 %v209_v26, %v81_v25  ;;  %v935_v47 = vadd.s32 4294967264, %v2107_v27  ;;  %v956_v56 = vadd.s32 4294967240, %v2107_v27  ;;  %v949_v6 = vadd.s32 4294967248, %v2107_v27 }
  0x70   :  { %v970_v11 = vadd.s32 4294967224, %v2107_v27  ;;  %v343_v20 = vmul.f32 %v215_v8, %v87_v7  ;;  %v963_v26 = vadd.s32 4294967232, %v2107_v27  ;;  %v977_v46 = vadd.s32 4294967216, %v2107_v27  ;;  %v93_v7 = vld [vmem:[%s2875_s0 + $0x290] sm:$0xff] }
  0x71   :  { %v606_v45 = vsel %vm395_vm0, %v337_v31, 0.0  ;;  %v221_v8 = vld [vmem:[%s2876_s1 + $0x290] sm:$0xff] }
  0x72   :  { %562 = vadd.xlane.f32.xlu1 %v561_v34  ;;  %559 = vadd.xlane.f32.xlu0 %v558_v36  ;;  %v2117_v34 = vshrl.u32 %v908_v18, 7  ;;  %v914_v36 = vadd.s32 4294967288, %v2107_v27 }
  0x74   :  { %v2143_v51 = vsub.s32 %v928_v35, %v2117_v34  ;;  %v2155_v55 = vsub.s32 %v921_v39, %v2117_v34  ;;  %v2160_v59 = vsub.s32 %v942_v43, %v2117_v34  ;;  %v2164_v63 = vsub.s32 %v935_v47, %v2117_v34  ;;  %v220_v43 = vld [vmem:[%s2876_s1 + $0x288] sm:$0xff]  ;;  %v91_v47 = vld [vmem:[%s2875_s0 + $0x280] sm:$0xff] }
  0x75   :  { %v2201_v25 = vsub.s32 %v949_v6, %v2117_v34  ;;  %v991_v6 = vadd.s32 4294967200, %v2107_v27 }
  0x76   :  { %568 = vadd.xlane.f32.xlu1 %v567_v42  ;;  %565 = vadd.xlane.f32.xlu0 %v564_v44  ;;  %v340_v42 = vmul.f32 %v212_v33, %v84_v32 }
  0x7a   :  { %574 = vadd.xlane.f32.xlu1 %v573_v50  ;;  %571 = vadd.xlane.f32.xlu0 %v570_v52  ;;  %v2140_v50 = vsub.s32 %v2107_v27, %v2117_v34  ;;  %v2146_v52 = vsub.s32 %v914_v36, %v2117_v34  ;;  %v984_v36 = vadd.s32 4294967208, %v2107_v27 }
  0x7e   :  { %580 = vadd.xlane.f32.xlu1 %v579_v58  ;;  %577 = vadd.xlane.f32.xlu0 %v576_v60  ;;  %v615_v58 = vsel %vm395_vm0, %v340_v42, 0.0  ;;  %v342_v60 = vmul.f32 %v214_v49, %v86_v48  ;;  %v92_v42 = vld [vmem:[%s2875_s0 + $0x288] sm:$0xff]  ;;  %v219_v48 = vld [vmem:[%s2876_s1 + $0x280] sm:$0xff]  ;;  %v998_v49 = vadd.s32 4294967192, %v2107_v27 }
  0x80   :  { %v621_v14 = vsel %vm395_vm0, %v342_v60, 0.0 }
  0x82   :  { %586 = vadd.xlane.f32.xlu1 %v585_v2  ;;  %583 = vadd.xlane.f32.xlu0 %v582_v4  ;;  %v216_v2 = vld [vmem:[%s2876_s1 + $0x268] sm:$0xff] }
  0x83   :  { %v344_v15 = vmul.f32 %v216_v2, %v88_v1  ;;  %v347_v1 = vmul.f32 %v219_v48, %v91_v47  ;;  %v94_v2 = vld [vmem:[%s2875_s0 + $0x298] sm:$0xff]  ;;  %v237_v47 = vld [vmem:[%s2876_s1 + $0x310] sm:$0xff] }
  0x85   :  { %v627_v33 = vsel %vm395_vm0, %v344_v15, 0.0  ;;  %v1012_v15 = vadd.s32 4294967176, %v2107_v27 }
  0x86   :  { %592 = vadd.xlane.f32.xlu1 %v591_v10  ;;  %589 = vadd.xlane.f32.xlu0 %v588_v12  ;;  %v2184_v10 = vsub.s32 %v956_v56, %v2117_v34 }
  0x8a   :  { %598 = vadd.xlane.f32.xlu1 %v597_v19  ;;  %595 = vadd.xlane.f32.xlu0 %v594_v21  ;;  %v618_v19 = vsel %vm395_vm0, %v341_v0, 0.0  ;;  %v90_v21 = vld [vmem:[%s2875_s0 + $0x278] sm:$0xff] }
  0x8b   :  { %v346_v35 = vmul.f32 %v218_v22, %v90_v21  ;;  %v108_v21 = vld [vmem:[%s2875_s0 + $0x308] sm:$0xff] }
  0x8c   :  { %v236_v22 = vld [vmem:[%s2876_s1 + $0x308] sm:$0xff] }
  0x8d   :  { %v633_v56 = vsel %vm395_vm0, %v346_v35, 0.0  ;;  %v2291_v35 = vsub.s32 %v1012_v15, %v2117_v34 }
  0x8e   :  { %604 = vadd.xlane.f32.xlu1 %v603_v28  ;;  %601 = vadd.xlane.f32.xlu0 %v600_v30  ;;  %v89_v28 = vld [vmem:[%s2875_s0 + $0x270] sm:$0xff]  ;;  %v2211_v30 = vsub.s32 %v970_v11, %v2117_v34 }
  0x8f   :  { %v404_v40 = vpop.xlane.xlu1 %403  ;;  %v398_v44 = vpop.xlane.xlu0 %397 }
  0x90   :  { %v913_v3 = vrot.slane %v398_v44, %v2140_v50  ;;  %v925_v9 = vrot.slane %v404_v40, %v2155_v55  ;;  %v624_v40 = vsel %vm395_vm0, %v343_v20, 0.0  ;;  %v349_v20 = vmul.f32 %v221_v8, %v93_v7 }
  0x92   :  { %610 = vadd.xlane.f32.xlu1 %v609_v41  ;;  %607 = vadd.xlane.f32.xlu0 %v606_v45  ;;  %v345_v41 = vmul.f32 %v217_v29, %v89_v28  ;;  %v2227_v45 = vsub.s32 %v963_v26, %v2117_v34  ;;  %v1005_v26 = vadd.s32 4294967184, %v2107_v27  ;;  %v107_v28 = vld [vmem:[%s2875_s0 + $0x300] sm:$0xff]  ;;  %v364_v27 = vmul.f32 %v236_v22, %v108_v21 }
  0x93   :  { %v407_v57 = vpop.xlane.xlu1 %406  ;;  %v401_v61 = vpop.xlane.xlu0 %400  ;;  %v235_v29 = vld [vmem:[%s2876_s1 + $0x300] sm:$0xff] }
  0x94   :  { %v932_v4 = vrot.slane %v407_v57, %v2143_v51  ;;  %v918_v5 = vrot.slane %v401_v61, %v2146_v52  ;;  %v2240_v57 = vsub.s32 %v984_v36, %v2117_v34  ;;  %v630_v0 = vsel %vm395_vm0, %v345_v41, 0.0  ;;  %v123_v41 = vld [vmem:[%s2875_s0 + $0x380] sm:$0xff] }
  0x96   :  { %616 = vadd.xlane.f32.xlu1 %v615_v58  ;;  %v920_v12 = vsel %vm919_vm1, %v918_v5, %v913_v3  ;;  %613 = vadd.xlane.f32.xlu0 %v612_v62  ;;  %v348_v58 = vmul.f32 %v220_v43, %v92_v42  ;;  %v222_v3 = vld [vmem:[%s2876_s1 + $0x298] sm:$0xff]  ;;  %v2253_v5 = vsub.s32 %v977_v46, %v2117_v34  ;;  %v251_v42 = vld [vmem:[%s2876_s1 + $0x380] sm:$0xff]  ;;  %v109_v46 = vld [vmem:[%s2875_s0 + $0x310] sm:$0xff] }
  0x97   :  { %v413_v13 = vpop.xlane.xlu1 %412  ;;  %v927_v16 = vsel %vm926_vm2, %v925_v9, %v920_v12  ;;  %v410_v18 = vpop.xlane.xlu0 %409  ;;  %v2263_v9 = vsub.s32 %v998_v49, %v2117_v34 }
  0x98   :  { %v946_v17 = vrot.slane %v413_v13, %v2160_v59  ;;  %v934_v23 = vsel %vm933_vm3, %v932_v4, %v927_v16  ;;  %v939_v24 = vrot.slane %v410_v18, %v2164_v63  ;;  %v639_v13 = vsel %vm395_vm0, %v348_v58, 0.0 }
  0x9a   :  { %622 = vadd.xlane.f32.xlu1 %v621_v14  ;;  %v941_v31 = vsel %vm940_vm4, %v939_v24, %v934_v23  ;;  %619 = vadd.xlane.f32.xlu0 %v618_v19  ;;  %v350_v14 = vmul.f32 %v222_v3, %v94_v2  ;;  %v636_v19 = vsel %vm395_vm0, %v347_v1, 0.0  ;;  %v2279_v24 = vsub.s32 %v991_v6, %v2117_v34  ;;  %v124_v2 = vld [vmem:[%s2875_s0 + $0x388] sm:$0xff] }
  0x9b   :  { %v419_v32 = vpop.xlane.xlu1 %418  ;;  %v948_v38 = vsel %vm947_vm5, %v946_v17, %v941_v31  ;;  %v416_v39 = vpop.xlane.xlu0 %415  ;;  %v252_v3 = vld [vmem:[%s2876_s1 + $0x388] sm:$0xff] }
  0x9c   :  { %v960_v37 = vrot.slane %v419_v32, %v2184_v10  ;;  %v953_v44 = vrot.slane %v416_v39, %v2201_v25  ;;  %v642_v39 = vsel %vm395_vm0, %v349_v20, 0.0  ;;  %v380_v15 = vmul.f32 %v252_v3, %v124_v2  ;;  %v238_v20 = vld [vmem:[%s2876_s1 + $0x318] sm:$0xff] }
  0x9e   :  { %628 = vadd.xlane.f32.xlu1 %v627_v33  ;;  %v955_v53 = vsel %vm954_vm6, %v953_v44, %v948_v38  ;;  %625 = vadd.xlane.f32.xlu0 %v624_v40  ;;  %v645_v33 = vsel %vm395_vm0, %v350_v14, 0.0  ;;  %v363_v40 = vmul.f32 %v235_v29, %v107_v28  ;;  %v2304_v44 = vsub.s32 %v1005_v26, %v2117_v34 }
  0x9f   :  { %v425_v54 = vpop.xlane.xlu1 %424  ;;  %v962_v61 = vsel %vm961_vm7, %v960_v37, %v955_v53  ;;  %v422_v62 = vpop.xlane.xlu0 %421  ;;  %v687_v53 = vsel %vm395_vm0, %v364_v27, 0.0  ;;  %v239_v27 = vld [vmem:[%s2876_s1 + $0x320] sm:$0xff] }
  0xa0   :  { %v974_v60 = vrot.slane %v425_v54, %v2211_v30  ;;  %v967_v4 = vrot.slane %v422_v62, %v2227_v45  ;;  %v379_v54 = vmul.f32 %v251_v42, %v123_v41  ;;  %v95_v62 = vld [vmem:[%s2875_s0 + $0x2a0] sm:$0xff] }
  0xa2   :  { %634 = vadd.xlane.f32.xlu1 %v633_v56  ;;  %v969_v11 = vsel %vm968_vm8, %v967_v4, %v962_v61  ;;  %631 = vadd.xlane.f32.xlu0 %v630_v0  ;;  %v365_v61 = vmul.f32 %v237_v47, %v109_v46  ;;  %v223_v0 = vld [vmem:[%s2876_s1 + $0x2a0] sm:$0xff]  ;;  %v732_v7 = vsel %vm395_vm0, %v379_v54, 0.0  ;;  %v225_v54 = vld [vmem:[%s2876_s1 + $0x2b0] sm:$0xff] }
  0xa3   :  { %v431_v12 = vpop.xlane.xlu1 %430  ;;  %v976_v17 = vsel %vm975_vm9, %v974_v60, %v969_v11  ;;  %v428_v18 = vpop.xlane.xlu0 %427  ;;  %v684_v60 = vsel %vm395_vm0, %v363_v40, 0.0  ;;  %v351_v8 = vmul.f32 %v223_v0, %v95_v62 }
  0xa4   :  { %v988_v16 = vrot.slane %v431_v12, %v2240_v57  ;;  %v981_v23 = vrot.slane %v428_v18, %v2253_v5  ;;  %v690_v14 = vsel %vm395_vm0, %v365_v61, 0.0 }
  0xa6   :  { %640 = vadd.xlane.f32.xlu1 %v639_v13  ;;  %v983_v31 = vsel %vm982_vm10, %v981_v23, %v976_v17  ;;  %637 = vadd.xlane.f32.xlu0 %v636_v19  ;;  %v253_v17 = vld [vmem:[%s2876_s1 + $0x390] sm:$0xff]  ;;  %v110_v19 = vld [vmem:[%s2875_s0 + $0x318] sm:$0xff]  ;;  %v648_v23 = vsel %vm395_vm0, %v351_v8, 0.0  ;;  %v255_v8 = vld [vmem:[%s2876_s1 + $0x3a0] sm:$0xff] }
  0xa7   :  { %v437_v32 = vpop.xlane.xlu1 %436  ;;  %v990_v37 = vsel %vm989_vm11, %v988_v16, %v983_v31  ;;  %v434_v38 = vpop.xlane.xlu0 %433  ;;  %v125_v16 = vld [vmem:[%s2875_s0 + $0x390] sm:$0xff]  ;;  %v735_v31 = vsel %vm395_vm0, %v380_v15, 0.0 }
  0xa8   :  { %v1002_v36 = vrot.slane %v437_v32, %v2263_v9  ;;  %v995_v43 = vrot.slane %v434_v38, %v2279_v24  ;;  %v381_v26 = vmul.f32 %v253_v17, %v125_v16  ;;  %v366_v32 = vmul.f32 %v238_v20, %v110_v19  ;;  %v224_v38 = vld [vmem:[%s2876_s1 + $0x2a8] sm:$0xff] }
  0xaa   :  { %646 = vadd.xlane.f32.xlu1 %v645_v33  ;;  %v997_v48 = vsel %vm996_vm12, %v995_v43, %v990_v37  ;;  %643 = vadd.xlane.f32.xlu0 %v642_v39  ;;  %v111_v33 = vld [vmem:[%s2875_s0 + $0x320] sm:$0xff]  ;;  %v96_v37 = vld [vmem:[%s2875_s0 + $0x2a8] sm:$0xff]  ;;  %v738_v41 = vsel %vm395_vm0, %v381_v26, 0.0  ;;  %v113_v26 = vld [vmem:[%s2875_s0 + $0x330] sm:$0xff] }
  0xab   :  { %v443_v49 = vpop.xlane.xlu1 %442  ;;  %v1004_v56 = vsel %vm2878_vm13, %v1002_v36, %v997_v48  ;;  %v440_v58 = vpop.xlane.xlu0 %439  ;;  %v367_v42 = vmul.f32 %v239_v27, %v111_v33  ;;  %v693_v48 = vsel %vm395_vm0, %v366_v32, 0.0  ;;  %v226_v32 = vld [vmem:[%s2876_s1 + $0x2b8] sm:$0xff] }
  0xac   :  { %v1016_v34 = vrot.slane %v443_v49, %v2291_v35  ;;  %v1009_v1 = vrot.slane %v440_v58, %v2304_v44  ;;  %v352_v49 = vmul.f32 %v224_v38, %v96_v37  ;;  %v254_v58 = vld [vmem:[%s2876_s1 + $0x398] sm:$0xff] }
  0xad   :  { %v696_v62 = vsel %vm395_vm0, %v367_v42, 0.0 }
  0xae   :  { %688 = vadd.xlane.f32.xlu1 %v687_v53  ;;  %v1011_v4 = vsel %vm1010_vm14, %v1009_v1, %v1004_v56  ;;  %685 = vadd.xlane.f32.xlu0 %v684_v60  ;;  %v97_v53 = vld [vmem:[%s2875_s0 + $0x2b0] sm:$0xff]  ;;  %v126_v56 = vld [vmem:[%s2875_s0 + $0x398] sm:$0xff] }
  0xaf   :  { %v449_v6 = vpop.xlane.xlu1 %448  ;;  %v2333_v11 = vsel %vm1017_vm15, %v1016_v34, %v1011_v4  ;;  %v446_v13 = vpop.xlane.xlu0 %445  ;;  %v353_v0 = vmul.f32 %v225_v54, %v97_v53  ;;  %v651_v4 = vsel %vm395_vm0, %v352_v49, 0.0  ;;  %v256_v49 = vld [vmem:[%s2876_s1 + $0x3a8] sm:$0xff] }
  0xb0   :  { %v1026_v12 = vrot.slane %v449_v6, %v2146_v52  ;;  %v1022_v18 = vrot.slane %v446_v13, %v2140_v50  ;;  %v382_v6 = vmul.f32 %v254_v58, %v126_v56  ;;  %v112_v13 = vld [vmem:[%s2875_s0 + $0x328] sm:$0xff] }
  0xb1   :  { %v654_v17 = vsel %vm395_vm0, %v353_v0, 0.0 }
  0xb2   :  { %733 = vadd.xlane.f32.xlu1 %v732_v7  ;;  %v1027_v21 = vsel %vm919_vm1, %v1026_v12, %v1022_v18  ;;  %691 = vadd.xlane.f32.xlu0 %v690_v14  ;;  %v127_v7 = vld [vmem:[%s2875_s0 + $0x3a0] sm:$0xff]  ;;  %v240_v14 = vld [vmem:[%s2876_s1 + $0x328] sm:$0xff] }
  0xb3   :  { %v455_v22 = vpop.xlane.xlu1 %454  ;;  %v452_v29 = vpop.xlane.xlu0 %451  ;;  %v383_v18 = vmul.f32 %v255_v8, %v127_v7 }
  0xb4   :  { %v1036_v28 = vrot.slane %v455_v22, %v2143_v51  ;;  %v1031_v36 = vrot.slane %v452_v29, %v2155_v55  ;;  %v741_v22 = vsel %vm395_vm0, %v382_v6, 0.0  ;;  %v242_v6 = vld [vmem:[%s2876_s1 + $0x338] sm:$0xff] }
  0xb6   :  { %649 = vadd.xlane.f32.xlu1 %v648_v23  ;;  %v1032_v39 = vsel %vm926_vm2, %v1031_v36, %v1027_v21  ;;  %736 = vadd.xlane.f32.xlu0 %v735_v31  ;;  %v368_v23 = vmul.f32 %v240_v14, %v112_v13  ;;  %v98_v31 = vld [vmem:[%s2875_s0 + $0x2b8] sm:$0xff]  ;;  %v744_v36 = vsel %vm395_vm0, %v383_v18, 0.0 }
  0xb7   :  { %v461_v40 = vpop.xlane.xlu1 %460  ;;  %v1037_v46 = vsel %vm933_vm3, %v1036_v28, %v1032_v39  ;;  %v458_v47 = vpop.xlane.xlu0 %457  ;;  %v241_v28 = vld [vmem:[%s2876_s1 + $0x330] sm:$0xff]  ;;  %v354_v42 = vmul.f32 %v226_v32, %v98_v31 }
  0xb8   :  { %v1046_v43 = vrot.slane %v461_v40, %v2160_v59  ;;  %v1041_v34 = vrot.slane %v458_v47, %v2164_v63  ;;  %v369_v37 = vmul.f32 %v241_v28, %v113_v26 }
  0xba   :  { %739 = vadd.xlane.f32.xlu1 %v738_v41  ;;  %v1042_v60 = vsel %vm940_vm4, %v1041_v34, %v1037_v46  ;;  %694 = vadd.xlane.f32.xlu0 %v693_v48  ;;  %v699_v41 = vsel %vm395_vm0, %v368_v23, 0.0  ;;  %v227_v46 = vld [vmem:[%s2876_s1 + $0x2c0] sm:$0xff]  ;;  %v128_v48 = vld [vmem:[%s2875_s0 + $0x3a8] sm:$0xff]  ;;  %v702_v34 = vsel %vm395_vm0, %v369_v37, 0.0 }
  0xbb   :  { %v467_v61 = vpop.xlane.xlu1 %466  ;;  %v1047_v2 = vsel %vm947_vm5, %v1046_v43, %v1042_v60  ;;  %v464_v3 = vpop.xlane.xlu0 %463  ;;  %v99_v43 = vld [vmem:[%s2875_s0 + $0x2c0] sm:$0xff]  ;;  %v384_v0 = vmul.f32 %v256_v49, %v128_v48  ;;  %v228_v23 = vld [vmem:[%s2876_s1 + $0x2c8] sm:$0xff] }
  0xbc   :  { %v1056_v1 = vrot.slane %v467_v61, %v2184_v10  ;;  %v1051_v12 = vrot.slane %v464_v3, %v2201_v25  ;;  %v355_v56 = vmul.f32 %v227_v46, %v99_v43  ;;  %v258_v43 = vld [vmem:[%s2876_s1 + $0x3b8] sm:$0xff] }
  0xbe   :  { %697 = vadd.xlane.f32.xlu1 %v696_v62  ;;  %v1052_v15 = vsel %vm954_vm6, %v1051_v12, %v1047_v2  ;;  %652 = vadd.xlane.f32.xlu0 %v651_v4  ;;  %v657_v62 = vsel %vm395_vm0, %v354_v42, 0.0  ;;  %v257_v2 = vld [vmem:[%s2876_s1 + $0x3b0] sm:$0xff]  ;;  %v114_v4 = vld [vmem:[%s2875_s0 + $0x338] sm:$0xff]  ;;  %v660_v12 = vsel %vm395_vm0, %v355_v56, 0.0  ;;  %v131_v56 = vld [vmem:[%s2875_s0 + $0x3c0] sm:$0xff] }
  0xbf   :  { %v473_v16 = vpop.xlane.xlu1 %472  ;;  %v1057_v20 = vsel %vm961_vm7, %v1056_v1, %v1052_v15  ;;  %v470_v21 = vpop.xlane.xlu0 %469  ;;  %v129_v1 = vld [vmem:[%s2875_s0 + $0x3b0] sm:$0xff]  ;;  %v370_v18 = vmul.f32 %v242_v6, %v114_v4  ;;  %v130_v42 = vld [vmem:[%s2875_s0 + $0x3b8] sm:$0xff] }
  0xc0   :  { %v1066_v19 = vrot.slane %v473_v16, %v2211_v30  ;;  %v1061_v29 = vrot.slane %v470_v21, %v2227_v45  ;;  %v385_v13 = vmul.f32 %v257_v2, %v129_v1 }
  0xc2   :  { %655 = vadd.xlane.f32.xlu1 %v654_v17  ;;  %v1062_v33 = vsel %vm968_vm8, %v1061_v29, %v1057_v20  ;;  %742 = vadd.xlane.f32.xlu0 %v741_v22  ;;  %v747_v17 = vsel %vm395_vm0, %v384_v0, 0.0  ;;  %v243_v20 = vld [vmem:[%s2876_s1 + $0x340] sm:$0xff]  ;;  %v100_v22 = vld [vmem:[%s2875_s0 + $0x2c8] sm:$0xff]  ;;  %v750_v29 = vsel %vm395_vm0, %v385_v13, 0.0  ;;  %v117_v13 = vld [vmem:[%s2875_s0 + $0x350] sm:$0xff] }
  0xc3   :  { %v479_v27 = vpop.xlane.xlu1 %478  ;;  %v1067_v39 = vsel %vm975_vm9, %v1066_v19, %v1062_v33  ;;  %v476_v40 = vpop.xlane.xlu0 %475  ;;  %v115_v19 = vld [vmem:[%s2875_s0 + $0x340] sm:$0xff]  ;;  %v356_v37 = vmul.f32 %v228_v23, %v100_v22 }
  0xc4   :  { %v1076_v38 = vrot.slane %v479_v27, %v2240_v57  ;;  %v1071_v47 = vrot.slane %v476_v40, %v2253_v5  ;;  %v371_v31 = vmul.f32 %v243_v20, %v115_v19 }
  0xc6   :  { %745 = vadd.xlane.f32.xlu1 %v744_v36  ;;  %v1072_v53 = vsel %vm982_vm10, %v1071_v47, %v1067_v39  ;;  %700 = vadd.xlane.f32.xlu0 %v699_v41  ;;  %v705_v36 = vsel %vm395_vm0, %v370_v18, 0.0  ;;  %v229_v39 = vld [vmem:[%s2876_s1 + $0x2d0] sm:$0xff]  ;;  %v708_v48 = vsel %vm395_vm0, %v371_v31, 0.0  ;;  %v103_v31 = vld [vmem:[%s2875_s0 + $0x2e0] sm:$0xff] }
  0xc7   :  { %v485_v54 = vpop.xlane.xlu1 %484  ;;  %v1077_v60 = vsel %vm989_vm11, %v1076_v38, %v1072_v53  ;;  %v482_v61 = vpop.xlane.xlu0 %481  ;;  %v101_v38 = vld [vmem:[%s2875_s0 + $0x2d0] sm:$0xff] }
  0xc8   :  { %v1086_v58 = vrot.slane %v485_v54, %v2263_v9  ;;  %v1081_v3 = vrot.slane %v482_v61, %v2279_v24  ;;  %v357_v49 = vmul.f32 %v229_v39, %v101_v38  ;;  %v663_v54 = vsel %vm395_vm0, %v356_v37, 0.0  ;;  %v116_v61 = vld [vmem:[%s2875_s0 + $0x348] sm:$0xff] }
  0xca   :  { %703 = vadd.xlane.f32.xlu1 %v702_v34  ;;  %v1082_v7 = vsel %vm996_vm12, %v1081_v3, %v1077_v60  ;;  %658 = vadd.xlane.f32.xlu0 %v657_v62  ;;  %v386_v34 = vmul.f32 %v258_v43, %v130_v42  ;;  %v244_v62 = vld [vmem:[%s2876_s1 + $0x348] sm:$0xff]  ;;  %v666_v2 = vsel %vm395_vm0, %v357_v49, 0.0  ;;  %v133_v49 = vld [vmem:[%s2875_s0 + $0x3d0] sm:$0xff] }
  0xcb   :  { %v491_v8 = vpop.xlane.xlu1 %490  ;;  %v1087_v15 = vsel %vm2878_vm13, %v1086_v58, %v1082_v7  ;;  %v488_v16 = vpop.xlane.xlu0 %487  ;;  %vm1572_vm13 = vcmask 1041409   ;;  %v259_v58 = vld [vmem:[%s2876_s1 + $0x3c0] sm:$0xff] }
  0xcc   :  { %v1096_v14 = vrot.slane %v491_v8, %v2291_v35  ;;  %v1091_v21 = vrot.slane %v488_v16, %v2304_v44  ;;  %v387_v3 = vmul.f32 %v259_v58, %v131_v56  ;;  %v753_v8 = vsel %vm395_vm0, %v386_v34, 0.0  ;;  %v102_v16 = vld [vmem:[%s2875_s0 + $0x2d8] sm:$0xff] }
  0xcd   :  { %v246_v34 = vld [vmem:[%s2876_s1 + $0x358] sm:$0xff] }
  0xce   :  { %661 = vadd.xlane.f32.xlu1 %v660_v12  ;;  %v1092_v26 = vsel %vm1010_vm14, %v1091_v21, %v1087_v15  ;;  %748 = vadd.xlane.f32.xlu0 %v747_v17  ;;  %v372_v12 = vmul.f32 %v244_v62, %v116_v61  ;;  %v230_v17 = vld [vmem:[%s2876_s1 + $0x2d8] sm:$0xff]  ;;  %v756_v20 = vsel %vm395_vm0, %v387_v3, 0.0 }
  0xcf   :  { %v497_v28 = vpop.xlane.xlu1 %496  ;;  %v1097_v32 = vsel %vm1017_vm15, %v1096_v14, %v1092_v26  ;;  %v494_v27 = vpop.xlane.xlu0 %493  ;;  %v245_v14 = vld [vmem:[%s2876_s1 + $0x350] sm:$0xff] }
  0xd0   :  { %v1105_v33 = vrot.slane %v497_v28, %v2146_v52  ;;  %v2487_v40 = vsel %vm1572_vm13, %v1097_v32, %v2333_v11  ;;  %v1101_v41 = vrot.slane %v494_v27, %v2140_v50  ;;  %v373_v21 = vmul.f32 %v245_v14, %v117_v13  ;;  %v231_v32 = vld [vmem:[%s2876_s1 + $0x2e0] sm:$0xff]  ;;  %v132_v27 = vld [vmem:[%s2875_s0 + $0x3c8] sm:$0xff] }
  0xd1   :  { %v711_v28 = vsel %vm395_vm0, %v372_v12, 0.0  ;;  %v232_v12 = vld [vmem:[%s2876_s1 + $0x2e8] sm:$0xff]  ;;  %vm2879_vm13 = vcmask 917312  }
  0xd2   :  { %751 = vadd.xlane.f32.xlu1 %v750_v29  ;;  %v1106_v46 = vsel %vm919_vm1, %v1105_v33, %v1101_v41  ;;  %706 = vadd.xlane.f32.xlu0 %v705_v36  ;;  %v358_v29 = vmul.f32 %v230_v17, %v102_v16  ;;  %v260_v36 = vld [vmem:[%s2876_s1 + $0x3c8] sm:$0xff]  ;;  %v714_v39 = vsel %vm395_vm0, %v373_v21, 0.0  ;;  %v359_v41 = vmul.f32 %v231_v32, %v103_v31 }
  0xd3   :  { %v503_v47 = vpop.xlane.xlu1 %502  ;;  %v500_v53 = vpop.xlane.xlu0 %499 }
  0xd4   :  { %v1115_v11 = vrot.slane %v503_v47, %v2143_v51  ;;  %v1110_v60 = vrot.slane %v500_v53, %v2155_v55  ;;  %v669_v47 = vsel %vm395_vm0, %v358_v29, 0.0  ;;  %v262_v29 = vld [vmem:[%s2876_s1 + $0x3d8] sm:$0xff] }
  0xd6   :  { %709 = vadd.xlane.f32.xlu1 %v708_v48  ;;  %v1111_v0 = vsel %vm926_vm2, %v1110_v60, %v1106_v46  ;;  %664 = vadd.xlane.f32.xlu0 %v663_v54  ;;  %v388_v48 = vmul.f32 %v260_v36, %v132_v27  ;;  %v118_v54 = vld [vmem:[%s2875_s0 + $0x358] sm:$0xff]  ;;  %v672_v60 = vsel %vm395_vm0, %v359_v41, 0.0 }
  0xd7   :  { %v509_v1 = vpop.xlane.xlu1 %508  ;;  %v1116_v6 = vsel %vm933_vm3, %v1115_v11, %v1111_v0  ;;  %v506_v7 = vpop.xlane.xlu0 %505  ;;  %v261_v11 = vld [vmem:[%s2876_s1 + $0x3d0] sm:$0xff]  ;;  %v374_v3 = vmul.f32 %v246_v34, %v118_v54 }
  0xd8   :  { %v1125_v4 = vrot.slane %v509_v1, %v2160_v59  ;;  %v1120_v15 = vrot.slane %v506_v7, %v2164_v63  ;;  %v389_v61 = vmul.f32 %v261_v11, %v133_v49 }
  0xda   :  { %667 = vadd.xlane.f32.xlu1 %v666_v2  ;;  %v1121_v18 = vsel %vm940_vm4, %v1120_v15, %v1116_v6  ;;  %754 = vadd.xlane.f32.xlu0 %v753_v8  ;;  %v759_v2 = vsel %vm395_vm0, %v388_v48, 0.0  ;;  %v247_v6 = vld [vmem:[%s2876_s1 + $0x360] sm:$0xff]  ;;  %v104_v8 = vld [vmem:[%s2875_s0 + $0x2e8] sm:$0xff]  ;;  %v762_v15 = vsel %vm395_vm0, %v389_v61, 0.0 }
  0xdb   :  { %v515_v19 = vpop.xlane.xlu1 %514  ;;  %v1126_v23 = vsel %vm947_vm5, %v1125_v4, %v1121_v18  ;;  %v512_v26 = vpop.xlane.xlu0 %511  ;;  %v119_v4 = vld [vmem:[%s2875_s0 + $0x360] sm:$0xff]  ;;  %v360_v21 = vmul.f32 %v232_v12, %v104_v8  ;;  %v248_v48 = vld [vmem:[%s2876_s1 + $0x368] sm:$0xff] }
  0xdc   :  { %v1135_v22 = vrot.slane %v515_v19, %v2184_v10  ;;  %v1130_v33 = vrot.slane %v512_v26, %v2201_v25  ;;  %v375_v16 = vmul.f32 %v247_v6, %v119_v4  ;;  %v234_v4 = vld [vmem:[%s2876_s1 + $0x2f8] sm:$0xff] }
  0xde   :  { %757 = vadd.xlane.f32.xlu1 %v756_v20  ;;  %v1131_v37 = vsel %vm954_vm6, %v1130_v33, %v1126_v23  ;;  %712 = vadd.xlane.f32.xlu0 %v711_v28  ;;  %v717_v20 = vsel %vm395_vm0, %v374_v3, 0.0  ;;  %v233_v23 = vld [vmem:[%s2876_s1 + $0x2f0] sm:$0xff]  ;;  %v134_v28 = vld [vmem:[%s2875_s0 + $0x3d8] sm:$0xff]  ;;  %v720_v33 = vsel %vm395_vm0, %v375_v16, 0.0 }
  0xdf   :  { %v521_v38 = vpop.xlane.xlu1 %520  ;;  %v1136_v43 = vsel %vm961_vm7, %v1135_v22, %v1131_v37  ;;  %v518_v46 = vpop.xlane.xlu0 %517  ;;  %v105_v22 = vld [vmem:[%s2875_s0 + $0x2f0] sm:$0xff]  ;;  %v390_v41 = vmul.f32 %v262_v29, %v134_v28  ;;  %v106_v3 = vld [vmem:[%s2875_s0 + $0x2f8] sm:$0xff] }
  0xe0   :  { %v1145_v42 = vrot.slane %v521_v38, %v2211_v30  ;;  %v1140_v53 = vrot.slane %v518_v46, %v2227_v45  ;;  %v361_v27 = vmul.f32 %v233_v23, %v105_v22  ;;  %v122_v16 = vld [vmem:[%s2875_s0 + $0x378] sm:$0xff] }
  0xe2   :  { %715 = vadd.xlane.f32.xlu1 %v714_v39  ;;  %v1141_v56 = vsel %vm968_vm8, %v1140_v53, %v1136_v43  ;;  %670 = vadd.xlane.f32.xlu0 %v669_v47  ;;  %v675_v39 = vsel %vm395_vm0, %v360_v21, 0.0  ;;  %v263_v43 = vld [vmem:[%s2876_s1 + $0x3e0] sm:$0xff]  ;;  %v120_v47 = vld [vmem:[%s2875_s0 + $0x368] sm:$0xff]  ;;  %v678_v53 = vsel %vm395_vm0, %v361_v27, 0.0  ;;  %v138_v27 = vld [vmem:[%s2875_s0 + $0x3f8] sm:$0xff] }
  0xe3   :  { %v527_v58 = vpop.xlane.xlu1 %526  ;;  %v1146_v0 = vsel %vm975_vm9, %v1145_v42, %v1141_v56  ;;  %v524_v1 = vpop.xlane.xlu0 %523  ;;  %v135_v42 = vld [vmem:[%s2875_s0 + $0x3e0] sm:$0xff]  ;;  %v376_v61 = vmul.f32 %v248_v48, %v120_v47 }
  0xe4   :  { %v1155_v62 = vrot.slane %v527_v58, %v2240_v57  ;;  %v1150_v7 = vrot.slane %v524_v1, %v2253_v5  ;;  %v391_v54 = vmul.f32 %v263_v43, %v135_v42 }
  0xe6   :  { %673 = vadd.xlane.f32.xlu1 %v672_v60  ;;  %v1151_v13 = vsel %vm982_vm10, %v1150_v7, %v1146_v0  ;;  %760 = vadd.xlane.f32.xlu0 %v759_v2  ;;  %v765_v60 = vsel %vm395_vm0, %v390_v41, 0.0  ;;  %v249_v0 = vld [vmem:[%s2876_s1 + $0x370] sm:$0xff]  ;;  %v768_v8 = vsel %vm395_vm0, %v391_v54, 0.0 }
  0xe7   :  { %v533_v14 = vpop.xlane.xlu1 %532  ;;  %v1156_v18 = vsel %vm989_vm11, %v1155_v62, %v1151_v13  ;;  %v530_v19 = vpop.xlane.xlu0 %529  ;;  %v121_v62 = vld [vmem:[%s2875_s0 + $0x370] sm:$0xff] }
  0xe8   :  { %v1165_v17 = vrot.slane %v533_v14, %v2263_v9  ;;  %v1160_v26 = vrot.slane %v530_v19, %v2279_v24  ;;  %v377_v12 = vmul.f32 %v249_v0, %v121_v62  ;;  %v723_v14 = vsel %vm395_vm0, %v376_v61, 0.0  ;;  %v136_v19 = vld [vmem:[%s2875_s0 + $0x3e8] sm:$0xff] }
  0xea   :  { %763 = vadd.xlane.f32.xlu1 %v762_v15  ;;  %v1161_v31 = vsel %vm996_vm12, %v1160_v26, %v1156_v18  ;;  %718 = vadd.xlane.f32.xlu0 %v717_v20  ;;  %v362_v15 = vmul.f32 %v234_v4, %v106_v3  ;;  %v264_v20 = vld [vmem:[%s2876_s1 + $0x3e8] sm:$0xff]  ;;  %v726_v23 = vsel %vm395_vm0, %v377_v12, 0.0 }
  0xeb   :  { %v539_v32 = vpop.xlane.xlu1 %538  ;;  %v1166_v37 = vsel %vm2879_vm13, %v1165_v17, %v1161_v31  ;;  %v536_v38 = vpop.xlane.xlu0 %535  ;;  %vm1574_vm13 = vcmask 1042434   ;;  %v250_v17 = vld [vmem:[%s2876_s1 + $0x378] sm:$0xff] }
  0xec   :  { %v1175_v36 = vrot.slane %v539_v32, %v2291_v35  ;;  %v1170_v46 = vrot.slane %v536_v38, %v2304_v44  ;;  %v378_v26 = vmul.f32 %v250_v17, %v122_v16  ;;  %v681_v32 = vsel %vm395_vm0, %v362_v15, 0.0  ;;  %v137_v38 = vld [vmem:[%s2875_s0 + $0x3f0] sm:$0xff] }
  0xee   :  { %721 = vadd.xlane.f32.xlu1 %v720_v33  ;;  %v1171_v49 = vsel %vm1010_vm14, %v1170_v46, %v1166_v37  ;;  %676 = vadd.xlane.f32.xlu0 %v675_v39  ;;  %v392_v33 = vmul.f32 %v264_v20, %v136_v19  ;;  %v265_v39 = vld [vmem:[%s2876_s1 + $0x3f0] sm:$0xff]  ;;  %v729_v43 = vsel %vm395_vm0, %v378_v26, 0.0 }
  0xef   :  { %v545_v11 = vpop.xlane.xlu1 %544  ;;  %v1176_v34 = vsel %vm1017_vm15, %v1175_v36, %v1171_v49  ;;  %v542_v58 = vpop.xlane.xlu0 %541  ;;  %v266_v36 = vld [vmem:[%s2876_s1 + $0x3f8] sm:$0xff] }
  0xf0   :  { %v1184_v56 = vrot.slane %v545_v11, %v2146_v52  ;;  %v2633_v1 = vsel %vm1574_vm13, %v1176_v34, %v2487_v40  ;;  %v1180_v2 = vrot.slane %v542_v58, %v2140_v50  ;;  %v394_v46 = vmul.f32 %v266_v36, %v138_v27 }
  0xf1   :  { %v771_v11 = vsel %vm395_vm0, %v392_v33, 0.0  ;;  %vm1576_vm13 = vcmask 1043459  }
  0xf2   :  { %679 = vadd.xlane.f32.xlu1 %v678_v53  ;;  %v1185_v6 = vsel %vm919_vm1, %v1184_v56, %v1180_v2  ;;  %766 = vadd.xlane.f32.xlu0 %v765_v60  ;;  %v393_v53 = vmul.f32 %v265_v39, %v137_v38  ;;  %v777_v58 = vsel %vm395_vm0, %v394_v46, 0.0 }
  0xf3   :  { %v551_v7 = vpop.xlane.xlu1 %550  ;;  %v548_v13 = vpop.xlane.xlu0 %547 }
  0xf4   :  { %v1194_v40 = vrot.slane %v551_v7, %v2143_v51  ;;  %v1189_v18 = vrot.slane %v548_v13, %v2155_v55  ;;  %v774_v0 = vsel %vm395_vm0, %v393_v53, 0.0  ;;  %vm2880_vm0 = vcmask 917312  }
  0xf6   :  { %769 = vadd.xlane.f32.xlu1 %v768_v8  ;;  %v1190_v21 = vsel %vm926_vm2, %v1189_v18, %v1185_v6  ;;  %724 = vadd.xlane.f32.xlu0 %v723_v14 }
  0xf7   :  { %v557_v22 = vpop.xlane.xlu1 %556  ;;  %v1195_v29 = vsel %vm933_vm3, %v1194_v40, %v1190_v21  ;;  %v554_v31 = vpop.xlane.xlu0 %553 }
  0xf8   :  { %v1204_v28 = vrot.slane %v557_v22, %v2160_v59  ;;  %v1199_v37 = vrot.slane %v554_v31, %v2164_v63 }
  0xfa   :  { %727 = vadd.xlane.f32.xlu1 %v726_v23  ;;  %v1200_v41 = vsel %vm940_vm4, %v1199_v37, %v1195_v29  ;;  %682 = vadd.xlane.f32.xlu0 %v681_v32 }
  0xfb   :  { %v563_v42 = vpop.xlane.xlu1 %562  ;;  %v1205_v48 = vsel %vm947_vm5, %v1204_v28, %v1200_v41  ;;  %v560_v49 = vpop.xlane.xlu0 %559 }
  0xfc   :  { %v1214_v47 = vrot.slane %v563_v42, %v2184_v10  ;;  %v1209_v54 = vrot.slane %v560_v49, %v2201_v25 }
  0xfe   :  { %730 = vadd.xlane.f32.xlu1 %v729_v43  ;;  %v1210_v34 = vsel %vm954_vm6, %v1209_v54, %v1205_v48  ;;  %772 = vadd.xlane.f32.xlu0 %v771_v11 }
  0xff   :  { %v569_v56 = vpop.xlane.xlu1 %568  ;;  %v1215_v61 = vsel %vm961_vm7, %v1214_v47, %v1210_v34  ;;  %v566_v62 = vpop.xlane.xlu0 %565 }
 0x100   :  { %v1224_v60 = vrot.slane %v569_v56, %v2211_v30  ;;  %v1219_v2 = vrot.slane %v566_v62, %v2227_v45 }
 0x102   :  { %778 = vadd.xlane.f32.xlu1 %v777_v58  ;;  %v1220_v3 = vsel %vm968_vm8, %v1219_v2, %v1215_v61  ;;  %775 = vadd.xlane.f32.xlu0 %v774_v0 }
 0x103   :  { %v575_v4 = vpop.xlane.xlu1 %574  ;;  %v1225_v7 = vsel %vm975_vm9, %v1224_v60, %v1220_v3  ;;  %v572_v8 = vpop.xlane.xlu0 %571 }
 0x104   :  { %v1234_v6 = vrot.slane %v575_v4, %v2240_v57  ;;  %v1229_v12 = vrot.slane %v572_v8, %v2253_v5 }
 0x106   :  { %v1230_v40 = vsel %vm982_vm10, %v1229_v12, %v1225_v7 }
 0x107   :  { %v581_v13 = vpop.xlane.xlu1 %580  ;;  %v1235_v15 = vsel %vm989_vm11, %v1234_v6, %v1230_v40  ;;  %v578_v16 = vpop.xlane.xlu0 %577 }
 0x108   :  { %v1244_v14 = vrot.slane %v581_v13, %v2263_v9  ;;  %v1239_v17 = vrot.slane %v578_v16, %v2279_v24 }
 0x10a   :  { %v1240_v18 = vsel %vm996_vm12, %v1239_v17, %v1235_v15 }
 0x10b   :  { %v587_v19 = vpop.xlane.xlu1 %586  ;;  %v1245_v21 = vsel %vm2880_vm0, %v1244_v14, %v1240_v18  ;;  %v584_v22 = vpop.xlane.xlu0 %583 }
 0x10c   :  { %v1254_v20 = vrot.slane %v587_v19, %v2291_v35  ;;  %v1249_v23 = vrot.slane %v584_v22, %v2304_v44 }
 0x10e   :  { %v1250_v26 = vsel %vm1010_vm14, %v1249_v23, %v1245_v21 }
 0x10f   :  { %v593_v28 = vpop.xlane.xlu1 %592  ;;  %v1255_v29 = vsel %vm1017_vm15, %v1254_v20, %v1250_v26  ;;  %v590_v32 = vpop.xlane.xlu0 %589 }
 0x110   :  { %v1263_v31 = vrot.slane %v593_v28, %v2146_v52  ;;  %v1577_v33 = vsel %vm1576_vm13, %v1255_v29, %v2633_v1  ;;  %v1259_v27 = vrot.slane %v590_v32, %v2140_v50  ;;  %vm1578_vm13 = vcmask 1044484  }
 0x112   :  { %v1264_v36 = vsel %vm919_vm1, %v1263_v31, %v1259_v27 }
 0x113   :  { %v599_v37 = vpop.xlane.xlu1 %598  ;;  %v596_v39 = vpop.xlane.xlu0 %595 }
 0x114   :  { %v1273_v38 = vrot.slane %v599_v37, %v2143_v51  ;;  %v1268_v41 = vrot.slane %v596_v39, %v2155_v55 }
 0x116   :  { %v1269_v42 = vsel %vm926_vm2, %v1268_v41, %v1264_v36 }
 0x117   :  { %v605_v43 = vpop.xlane.xlu1 %604  ;;  %v1274_v47 = vsel %vm933_vm3, %v1273_v38, %v1269_v42  ;;  %v602_v48 = vpop.xlane.xlu0 %601 }
 0x118   :  { %v1283_v46 = vrot.slane %v605_v43, %v2160_v59  ;;  %v1278_v1 = vrot.slane %v602_v48, %v2164_v63 }
 0x11a   :  { %v1279_v49 = vsel %vm940_vm4, %v1278_v1, %v1274_v47 }
 0x11b   :  { %v611_v11 = vpop.xlane.xlu1 %610  ;;  %v1284_v54 = vsel %vm947_vm5, %v1283_v46, %v1279_v49  ;;  %v608_v34 = vpop.xlane.xlu0 %607 }
 0x11c   :  { %v1293_v53 = vrot.slane %v611_v11, %v2184_v10  ;;  %v1288_v56 = vrot.slane %v608_v34, %v2201_v25 }
 0x11e   :  { %v1289_v58 = vsel %vm954_vm6, %v1288_v56, %v1284_v54 }
 0x11f   :  { %v617_v60 = vpop.xlane.xlu1 %616  ;;  %v1294_v62 = vsel %vm961_vm7, %v1293_v53, %v1289_v58  ;;  %v614_v0 = vpop.xlane.xlu0 %613 }
 0x120   :  { %v1303_v61 = vrot.slane %v617_v60, %v2211_v30  ;;  %v1298_v2 = vrot.slane %v614_v0, %v2227_v45 }
 0x122   :  { %v1299_v3 = vsel %vm968_vm8, %v1298_v2, %v1294_v62 }
 0x123   :  { %v623_v4 = vpop.xlane.xlu1 %622  ;;  %v1304_v7 = vsel %vm975_vm9, %v1303_v61, %v1299_v3  ;;  %v620_v8 = vpop.xlane.xlu0 %619 }
 0x124   :  { %v1313_v6 = vrot.slane %v623_v4, %v2240_v57  ;;  %v1308_v12 = vrot.slane %v620_v8, %v2253_v5 }
 0x126   :  { %v1309_v40 = vsel %vm982_vm10, %v1308_v12, %v1304_v7 }
 0x127   :  { %v629_v13 = vpop.xlane.xlu1 %628  ;;  %v1314_v15 = vsel %vm989_vm11, %v1313_v6, %v1309_v40  ;;  %v626_v16 = vpop.xlane.xlu0 %625 }
 0x128   :  { %v1323_v14 = vrot.slane %v629_v13, %v2263_v9  ;;  %v1318_v17 = vrot.slane %v626_v16, %v2279_v24 }
 0x12a   :  { %v1319_v18 = vsel %vm996_vm12, %v1318_v17, %v1314_v15 }
 0x12b   :  { %v635_v19 = vpop.xlane.xlu1 %634  ;;  %v1324_v21 = vsel %vm2880_vm0, %v1323_v14, %v1319_v18  ;;  %v632_v22 = vpop.xlane.xlu0 %631 }
 0x12c   :  { %v1333_v20 = vrot.slane %v635_v19, %v2291_v35  ;;  %v1328_v23 = vrot.slane %v632_v22, %v2304_v44 }
 0x12e   :  { %v1329_v26 = vsel %vm1010_vm14, %v1328_v23, %v1324_v21 }
 0x12f   :  { %v641_v28 = vpop.xlane.xlu1 %640  ;;  %v1334_v29 = vsel %vm1017_vm15, %v1333_v20, %v1329_v26  ;;  %v638_v32 = vpop.xlane.xlu0 %637 }
 0x130   :  { %v1342_v31 = vrot.slane %v641_v28, %v2146_v52  ;;  %v1338_v27 = vrot.slane %v638_v32, %v2140_v50  ;;  %v2737_v36 = vsel %vm1578_vm13, %v1334_v29, %v1577_v33 }
 0x132   :  { %v1343_v37 = vsel %vm919_vm1, %v1342_v31, %v1338_v27 }
 0x133   :  { %v647_v38 = vpop.xlane.xlu1 %646  ;;  %v644_v41 = vpop.xlane.xlu0 %643 }
 0x134   :  { %v1352_v39 = vrot.slane %v647_v38, %v2143_v51  ;;  %v1347_v42 = vrot.slane %v644_v41, %v2155_v55 }
 0x136   :  { %v1348_v43 = vsel %vm926_vm2, %v1347_v42, %v1343_v37 }
 0x137   :  { %v689_v46 = vpop.xlane.xlu1 %688  ;;  %v686_v48 = vpop.xlane.xlu0 %685  ;;  %v1353_v1 = vsel %vm933_vm3, %v1352_v39, %v1348_v43 }
 0x138   :  { %v1421_v47 = vrot.slane %v689_v46, %v2146_v52  ;;  %v1417_v49 = vrot.slane %v686_v48, %v2140_v50 }
 0x13a   :  { %v1422_v33 = vsel %vm919_vm1, %v1421_v47, %v1417_v49 }
 0x13b   :  { %v734_v11 = vpop.xlane.xlu1 %733  ;;  %v692_v53 = vpop.xlane.xlu0 %691 }
 0x13c   :  { %v1426_v54 = vrot.slane %v692_v53, %v2155_v55  ;;  %v1496_v38 = vrot.slane %v734_v11, %v2140_v50 }
 0x13e   :  { %v1427_v34 = vsel %vm926_vm2, %v1426_v54, %v1422_v33 }
 0x13f   :  { %v650_v56 = vpop.xlane.xlu1 %649  ;;  %v737_v58 = vpop.xlane.xlu0 %736 }
 0x140   :  { %v1500_v31 = vrot.slane %v737_v58, %v2146_v52  ;;  %v1357_v32 = vrot.slane %v650_v56, %v2164_v63 }
 0x142   :  { %v1501_v52 = vsel %vm919_vm1, %v1500_v31, %v1496_v38  ;;  %v1358_v49 = vsel %vm940_vm4, %v1357_v32, %v1353_v1  ;;  %vm1580_vm1 = vcmask 1045509  }
 0x143   :  { %v740_v60 = vpop.xlane.xlu1 %739  ;;  %v695_v61 = vpop.xlane.xlu0 %694 }
 0x144   :  { %v1505_v27 = vrot.slane %v740_v60, %v2155_v55  ;;  %v1431_v39 = vrot.slane %v695_v61, %v2143_v51 }
 0x146   :  { %v1506_v50 = vsel %vm926_vm2, %v1505_v27, %v1501_v52  ;;  %v1432_v54 = vsel %vm933_vm3, %v1431_v39, %v1427_v34  ;;  %vm1582_vm2 = vcmask 1046534  }
 0x147   :  { %v698_v62 = vpop.xlane.xlu1 %697  ;;  %v653_v0 = vpop.xlane.xlu0 %652 }
 0x148   :  { %v1362_v41 = vrot.slane %v653_v0, %v2160_v59  ;;  %v1436_v43 = vrot.slane %v698_v62, %v2164_v63 }
 0x14a   :  { %v1363_v56 = vsel %vm947_vm5, %v1362_v41, %v1358_v49  ;;  %v1437_v60 = vsel %vm940_vm4, %v1436_v43, %v1432_v54 }
 0x14b   :  { %v656_v2 = vpop.xlane.xlu1 %655  ;;  %v743_v3 = vpop.xlane.xlu0 %742 }
 0x14c   :  { %v1367_v46 = vrot.slane %v656_v2, %v2201_v25  ;;  %v1510_v47 = vrot.slane %v743_v3, %v2143_v51 }
 0x14e   :  { %v1368_v1 = vsel %vm954_vm6, %v1367_v46, %v1363_v56  ;;  %v1511_v61 = vsel %vm933_vm3, %v1510_v47, %v1506_v50  ;;  %vm2881_vm3 = vmmov %vm2880_vm0 }
 0x14f   :  { %v746_v4 = vpop.xlane.xlu1 %745  ;;  %v701_v6 = vpop.xlane.xlu0 %700 }
 0x150   :  { %v1515_v48 = vrot.slane %v746_v4, %v2164_v63  ;;  %v1441_v55 = vrot.slane %v701_v6, %v2160_v59 }
 0x152   :  { %v1516_v0 = vsel %vm940_vm4, %v1515_v48, %v1511_v61  ;;  %v1442_v34 = vsel %vm947_vm5, %v1441_v55, %v1437_v60  ;;  %vm2882_vm4 = vmmov %vm2880_vm0 }
 0x153   :  { %v704_v7 = vpop.xlane.xlu1 %703  ;;  %v659_v8 = vpop.xlane.xlu0 %658 }
 0x154   :  { %v1446_v33 = vrot.slane %v704_v7, %v2201_v25  ;;  %v1372_v11 = vrot.slane %v659_v8, %v2184_v10 }
 0x156   :  { %v1447_v3 = vsel %vm954_vm6, %v1446_v33, %v1442_v34  ;;  %v1373_v4 = vsel %vm961_vm7, %v1372_v11, %v1368_v1 }
 0x157   :  { %v662_v12 = vpop.xlane.xlu1 %661  ;;  %v749_v40 = vpop.xlane.xlu0 %748 }
 0x158   :  { %v1377_v51 = vrot.slane %v662_v12, %v2227_v45  ;;  %v1520_v58 = vrot.slane %v749_v40, %v2160_v59 }
 0x15a   :  { %v1378_v12 = vsel %vm968_vm8, %v1377_v51, %v1373_v4  ;;  %v1521_v40 = vsel %vm947_vm5, %v1520_v58, %v1516_v0  ;;  %vm2883_vm5 = vmmov %vm2880_vm0 }
 0x15b   :  { %v2749_v13 = vpop.xlane.xlu1 %751  ;;  %v2751_v14 = vpop.xlane.xlu0 %706 }
 0x15c   :  { %v1451_v2 = vrot.slane %v2751_v14, %v2184_v10  ;;  %v1525_v31 = vrot.slane %v2749_v13, %v2201_v25 }
 0x15e   :  { %v1452_v27 = vsel %vm961_vm7, %v1451_v2, %v1447_v3 }
 0x15f   :  { %v2753_v15 = vpop.xlane.xlu1 %709  ;;  %v665_v16 = vpop.xlane.xlu0 %664 }
 0x160   :  { %v1382_v62 = vrot.slane %v665_v16, %v2211_v30  ;;  %v1456_v6 = vrot.slane %v2753_v15, %v2227_v45 }
 0x162   :  { %v1383_v15 = vsel %vm975_vm9, %v1382_v62, %v1378_v12  ;;  %v1457_v39 = vsel %vm968_vm8, %v1456_v6, %v1452_v27 }
 0x163   :  { %v668_v17 = vpop.xlane.xlu1 %667  ;;  %v2755_v18 = vpop.xlane.xlu0 %754 }
 0x164   :  { %v1387_v59 = vrot.slane %v668_v17, %v2253_v5  ;;  %v1530_v25 = vrot.slane %v2755_v18, %v2184_v10 }
 0x166   :  { %v1388_v38 = vsel %vm982_vm10, %v1387_v59, %v1383_v15 }
 0x167   :  { %v2757_v19 = vpop.xlane.xlu1 %757  ;;  %v2759_v20 = vpop.xlane.xlu0 %712 }
 0x168   :  { %v1461_v16 = vrot.slane %v2759_v20, %v2211_v30 }
 0x16a   :  { %v1462_v43 = vsel %vm975_vm9, %v1461_v16, %v1457_v39 }
 0x16b   :  { %v2761_v21 = vpop.xlane.xlu1 %715  ;;  %v671_v22 = vpop.xlane.xlu0 %670 }
 0x16c   :  { %v1392_v7 = vrot.slane %v671_v22, %v2240_v57  ;;  %v1466_v22 = vrot.slane %v2761_v21, %v2253_v5 }
 0x16e   :  { %v1393_v13 = vsel %vm989_vm11, %v1392_v7, %v1388_v38  ;;  %v1467_v52 = vsel %vm982_vm10, %v1466_v22, %v1462_v43 }
 0x16f   :  { %v2763_v23 = vpop.xlane.xlu1 %673  ;;  %v2765_v26 = vpop.xlane.xlu0 %760 }
 0x170   :  { %v1397_v14 = vrot.slane %v2763_v23, %v2279_v24 }
 0x173   :  { %v2767_v28 = vpop.xlane.xlu1 %763  ;;  %v2769_v29 = vpop.xlane.xlu0 %718 }
 0x174   :  { %v1471_v20 = vrot.slane %v2769_v29, %v2240_v57  ;;  %v1398_v29 = vsel %vm996_vm12, %v1397_v14, %v1393_v13  ;;  %v1545_v50 = vrot.slane %v2767_v28, %v2253_v5 }
 0x177   :  { %v2774_v37 = vpop.xlane.xlu1 %721  ;;  %v677_v42 = vpop.xlane.xlu0 %676 }
 0x178   :  { %v1402_v32 = vrot.slane %v677_v42, %v2263_v9  ;;  %v1476_v21 = vrot.slane %v2774_v37, %v2279_v24  ;;  %v1535_v42 = vrot.slane %v2757_v19, %v2227_v45  ;;  %v1526_v37 = vsel %vm954_vm6, %v1525_v31, %v1521_v40 }
 0x179   :  { %v1540_v45 = vrot.slane %v2765_v26, %v2211_v30  ;;  %v1472_v19 = vsel %vm989_vm11, %v1471_v20, %v1467_v52  ;;  %v1531_v49 = vsel %vm961_vm7, %v1530_v25, %v1526_v37  ;;  %vm1584_vm6 = vcmask 1047559  }
 0x17a   :  { %v1403_v10 = vsel %vm2881_vm3, %v1402_v32, %v1398_v29  ;;  %v1477_v33 = vsel %vm996_vm12, %v1476_v21, %v1472_v19  ;;  %v1536_v58 = vsel %vm968_vm8, %v1535_v42, %v1531_v49 }
 0x17b   :  { %v680_v53 = vpop.xlane.xlu1 %679  ;;  %v2793_v63 = vpop.xlane.xlu0 %766  ;;  %v1541_v60 = vsel %vm975_vm9, %v1540_v45, %v1536_v58 }
 0x17c   :  { %v1407_v23 = vrot.slane %v680_v53, %v2304_v44  ;;  %v1550_v54 = vrot.slane %v2793_v63, %v2240_v57  ;;  %v1546_v63 = vsel %vm982_vm10, %v1545_v50, %v1541_v60 }
 0x17e   :  { %v1408_v55 = vsel %vm1010_vm14, %v1407_v23, %v1403_v10  ;;  %v1551_v62 = vsel %vm989_vm11, %v1550_v54, %v1546_v63 }
 0x17f   :  { %v770_v8 = vpop.xlane.xlu1 %769  ;;  %v725_v17 = vpop.xlane.xlu0 %724 }
 0x180   :  { %v1481_v46 = vrot.slane %v725_v17, %v2263_v9  ;;  %v1555_v5 = vrot.slane %v770_v8, %v2279_v24 }
 0x182   :  { %v1482_v56 = vsel %vm2882_vm4, %v1481_v46, %v1477_v33  ;;  %v1556_v24 = vsel %vm996_vm12, %v1555_v5, %v1551_v62 }
 0x183   :  { %v728_v41 = vpop.xlane.xlu1 %727  ;;  %v683_v47 = vpop.xlane.xlu0 %682 }
 0x184   :  { %v1486_v18 = vrot.slane %v728_v41, %v2304_v44  ;;  %v1412_v48 = vrot.slane %v683_v47, %v2291_v35 }
 0x186   :  { %v1413_v11 = vsel %vm1017_vm15, %v1412_v48, %v1408_v55  ;;  %v1487_v28 = vsel %vm1010_vm14, %v1486_v18, %v1482_v56 }
 0x187   :  { %v731_v53 = vpop.xlane.xlu1 %730  ;;  %v1581_v30 = vsel %vm1580_vm1, %v1413_v11, %v2737_v36  ;;  %v773_v51 = vpop.xlane.xlu0 %772 }
 0x188   :  { %v1491_v26 = vrot.slane %v731_v53, %v2291_v35  ;;  %v1560_v57 = vrot.slane %v773_v51, %v2263_v9 }
 0x18a   :  { %v1492_v1 = vsel %vm1017_vm15, %v1491_v26, %v1487_v28  ;;  %v1561_v59 = vsel %vm2883_vm5, %v1560_v57, %v1556_v24 }
 0x18b   :  { %v1583_v61 = vsel %vm1582_vm2, %v1492_v1, %v1581_v30  ;;  %v779_v36 = vpop.xlane.xlu1 %778  ;;  %v776_v0 = vpop.xlane.xlu0 %775 }
 0x18c   :  { %v1570_v34 = vrot.slane %v779_v36, %v2291_v35  ;;  %v1565_v2 = vrot.slane %v776_v0, %v2304_v44 }
 0x18e   :  { %v1566_v3 = vsel %vm1010_vm14, %v1565_v2, %v1561_v59 }
 0x18f   :  { %v1571_v9 = vsel %vm1017_vm15, %v1570_v34, %v1566_v3 }
 0x190   :  { %v1585_v4 = vsel %vm1584_vm6, %v1571_v9, %v1583_v61 }
 0x191   :  { %1587 = vst [vmem:[%s2877_s2] sm:$0xff] %v1585_v4 }

</bundles_post_ra>
